<compile_context>
chip_gen: v7x
topology: tpu7x:2x2x1
jax: 0.10.0
libtpu: 0.0.40
codegen_flags: <defaults>
</compile_context>

<pallas_src>
import functools

import jax
import jax.numpy as jnp
from jax.experimental import pallas as pl
from jax.experimental.pallas import tpu as pltpu


def lstm_kernel(x_ref, h0_ref, c0_ref, wih_ref, whh_ref, b_ref, wlin_ref,
                blin_ref, pred_ref, hn_ref, cn_ref):
    """One batch-block of the LSTM recurrence + final linear projection.

    x_ref    : (B, S)      input sequences (input_size == 1)
    h0_ref   : (B, Hp)     initial hidden state (Hp = hidden padded to 128)
    c0_ref   : (B, Hp)     initial cell state
    wih_ref  : (1, 4Hp)    fused input->gate weights, gate order (i, f, o, g)
    whh_ref  : (Hp, 4Hp)   fused hidden->gate weights, same order
    b_ref    : (1, 4Hp)    combined bias (b_ih + b_hh)
    wlin_ref : (1, Hp)     final Linear weight
    blin_ref : (1, 1)      final Linear bias
    pred_ref : (B, 1)      predictions[-1] per sequence
    hn_ref, cn_ref : (B, Hp) final recurrent state
    """
    seq_len = x_ref.shape[1]
    hp = whh_ref.shape[0]

    # Loop-invariant loads; the bf16 cast of W_hh is hoisted so the weight
    # stays resident (weight-stationary-ish) across the unrolled steps.
    wih = wih_ref[...]
    bias = b_ref[...]
    whh = whh_ref[...].astype(jnp.bfloat16)

    # State carried as SSA values (vregs), not VMEM scratch.
    h = h0_ref[...]
    c = c0_ref[...]

    # Serial recurrence, statically unrolled (seq_len is small and static).
    # TODO(synk): switch to lax.fori_loop with a modest unroll if seq_len grows.
    for t in range(seq_len):
        xt = x_ref[:, t:t + 1]                              # (B, 1) static slice
        gates = (xt * wih + bias                            # VPU (input_size==1)
                 + jnp.dot(h.astype(jnp.bfloat16), whh,     # (B,Hp)@(Hp,4Hp) MXU
                           preferred_element_type=jnp.float32))
        # Gate order (i, f, o, g); Hp is a multiple of 128 so every slice is
        # vreg-aligned: one sigmoid over 3Hp lanes, one tanh over Hp lanes.
        sig = jax.nn.sigmoid(gates[:, :3 * hp])
        g = jnp.tanh(gates[:, 3 * hp:])
        i = sig[:, :hp]
        f = sig[:, hp:2 * hp]
        o = sig[:, 2 * hp:]
        c = f * c + i * g
        h = o * jnp.tanh(c)

    # Linear(H, 1): VPU multiply + lane reduction (no 1-lane-output MXU matmul).
    pred_ref[...] = (jnp.sum(h * wlin_ref[...], axis=-1, keepdims=True)
                     + blin_ref[...])
    hn_ref[...] = h
    cn_ref[...] = c


def pack_lstm_params(w_ih, w_hh, b_ih, b_hh, w_lin, b_lin, *, lane=128):
    """Convert PyTorch nn.LSTM / nn.Linear parameters to the kernel layout.

    PyTorch layout (gate order i, f, g, o):
      w_ih (4H, I), w_hh (4H, H), b_ih (4H,), b_hh (4H,), w_lin (O, H), b_lin (O,)
    Kernel layout (gate order i, f, o, g; hidden zero-padded to Hp = mult of 128):
      wih (I, 4Hp), whh (Hp, 4Hp), bias (1, 4Hp), wlin (1, Hp), blin (1, 1)
    Zero padding keeps the padded hidden lanes of h / c identically zero.
    """
    H = w_hh.shape[1]
    out_size = w_lin.shape[0]
    assert out_size == 1, "kernel implements the module default output_size=1"
    hp = lane * ((H + lane - 1) // lane)

    def gates_ifog(a):                      # torch (i, f, g, o) -> (i, f, o, g)
        i, f, g, o = (a[k * H:(k + 1) * H] for k in range(4))
        return i, f, o, g

    def pad_h(a, axis):
        pad = [(0, 0)] * a.ndim
        pad[axis] = (0, hp - H)
        return jnp.pad(a, pad)

    wih = jnp.concatenate([pad_h(blk, 0) for blk in gates_ifog(w_ih)], axis=0).T
    whh = jnp.concatenate([pad_h(pad_h(blk, 1), 0) for blk in gates_ifog(w_hh)],
                          axis=0).T
    bias = jnp.concatenate([pad_h(blk, 0) for blk in gates_ifog(b_ih + b_hh)],
                           axis=0).reshape(1, 4 * hp)
    wlin = pad_h(w_lin, 1)                  # (1, Hp)
    blin = b_lin.reshape(1, 1)
    return (wih.astype(jnp.float32), whh.astype(jnp.float32),
            bias.astype(jnp.float32), wlin.astype(jnp.float32),
            blin.astype(jnp.float32))


@functools.partial(jax.jit, static_argnames=("b_block",))
def lstm_forward_batched(seqs, h0, c0, packed_params, *, b_block=8):
    """seqs: (B, S) f32. h0, c0: (B, H). Returns (pred (B,1), hn (B,H), cn (B,H))."""
    wih, whh, bias, wlin, blin = packed_params
    B, S = seqs.shape
    H = h0.shape[1]
    hp = whh.shape[0]
    gp = 4 * hp
    bp = b_block * pl.cdiv(B, b_block)

    x = jnp.pad(seqs.astype(jnp.float32), ((0, bp - B), (0, 0)))
    h0p = jnp.pad(h0.astype(jnp.float32), ((0, bp - B), (0, hp - H)))
    c0p = jnp.pad(c0.astype(jnp.float32), ((0, bp - B), (0, hp - H)))

    def batch_spec(cols):
        return pl.BlockSpec((b_block, cols), lambda b: (b, 0))

    def fixed_spec(rows, cols):
        return pl.BlockSpec((rows, cols), lambda b: (0, 0))

    pred, hn, cn = pl.pallas_call(
        lstm_kernel,
        out_shape=(jax.ShapeDtypeStruct((bp, 1), jnp.float32),
                   jax.ShapeDtypeStruct((bp, hp), jnp.float32),
                   jax.ShapeDtypeStruct((bp, hp), jnp.float32)),
        grid=(bp // b_block,),
        in_specs=[batch_spec(S), batch_spec(hp), batch_spec(hp),
                  fixed_spec(1, gp), fixed_spec(hp, gp), fixed_spec(1, gp),
                  fixed_spec(1, hp), fixed_spec(1, 1)],
        out_specs=(batch_spec(1), batch_spec(hp), batch_spec(hp)),
        compiler_params=pltpu.CompilerParams(
            dimension_semantics=("parallel",)),   # batch shards across TCs on v7x
    )(x, h0p, c0p, wih, whh, bias, wlin, blin)

    return pred[:B], hn[:B, :H], cn[:B, :H]


def lstm_module_forward(input_seq, packed_params, hidden_cell=None):
    """Mirror of LSTM.forward: one sequence (S,), returns (predictions[-1], hidden_cell)."""
    hp = packed_params[1].shape[0]
    if hidden_cell is None:
        hidden_cell = (jnp.zeros((1, hp), jnp.float32),
                       jnp.zeros((1, hp), jnp.float32))
    h0, c0 = hidden_cell
    pred, hn, cn = lstm_forward_batched(input_seq[None, :], h0, c0, packed_params)
    return pred[0], (hn, cn)


def init_torch_layout_params(key, input_size, hidden_size, output_size):
    """Random params in PyTorch layout / gate order, U(-1/sqrt(H), 1/sqrt(H))."""
    k = hidden_size ** -0.5
    ks = jax.random.split(key, 6)
    u = lambda kk, shape: jax.random.uniform(kk, shape, jnp.float32, -k, k)
    w_ih = u(ks[0], (4 * hidden_size, input_size))
    w_hh = u(ks[1], (4 * hidden_size, hidden_size))
    b_ih = u(ks[2], (4 * hidden_size,))
    b_hh = u(ks[3], (4 * hidden_size,))
    w_lin = u(ks[4], (output_size, hidden_size))
    b_lin = u(ks[5], (output_size,))
    return w_ih, w_hh, b_ih, b_hh, w_lin, b_lin


def lstm_forward_ref(seqs, torch_params):
    """Pure-JAX reference on the PyTorch-layout params (gate order i, f, g, o).

    The recurrent matmul uses bf16 operands with f32 accumulation to match the
    kernel's explicitly chosen MXU operand precision.
    """
    w_ih, w_hh, b_ih, b_hh, w_lin, b_lin = torch_params
    H = w_hh.shape[1]
    w_hh_t = w_hh.T.astype(jnp.bfloat16)
    bias = (b_ih + b_hh)[None, :]
    preds = []
    for s in range(seqs.shape[0]):
        x = seqs[s]
        h = jnp.zeros((1, H), jnp.float32)
        c = jnp.zeros((1, H), jnp.float32)
        for t in range(x.shape[0]):
            gates = (x[t] * w_ih[:, 0][None, :] + bias
                     + jnp.dot(h.astype(jnp.bfloat16), w_hh_t,
                               preferred_element_type=jnp.float32))
            i = jax.nn.sigmoid(gates[:, :H])
            f = jax.nn.sigmoid(gates[:, H:2 * H])
            g = jnp.tanh(gates[:, 2 * H:3 * H])
            o = jax.nn.sigmoid(gates[:, 3 * H:])
            c = f * c + i * g
            h = o * jnp.tanh(c)
        preds.append(jnp.sum(h * w_lin, axis=-1) + b_lin)
    return jnp.stack(preds)                                 # (B, output_size)


if __name__ == "__main__":
    INPUT_SIZE, HIDDEN_SIZE, OUTPUT_SIZE = 1, 100, 1   # module defaults
    SEQ_LEN, BATCH = 8, 4                              # 4 sliding windows of a series

    key = jax.random.PRNGKey(0)
    k_param, k_data = jax.random.split(key)

    torch_params = init_torch_layout_params(k_param, INPUT_SIZE, HIDDEN_SIZE,
                                             OUTPUT_SIZE)
    packed = pack_lstm_params(*torch_params)

    seqs = jax.random.normal(k_data, (BATCH, SEQ_LEN), jnp.float32)
    h0 = jnp.zeros((BATCH, HIDDEN_SIZE), jnp.float32)
    c0 = jnp.zeros((BATCH, HIDDEN_SIZE), jnp.float32)

    # Batched call: B independent sequences in one kernel invocation.
    pred, hn, cn = lstm_forward_batched(seqs, h0, c0, packed)
    jax.block_until_ready(pred)

    # Single-sequence API matching the PyTorch module's forward().
    pred0, _ = lstm_module_forward(seqs[0], packed, (h0[:1], c0[:1]))
    jax.block_until_ready(pred0)

    ref = lstm_forward_ref(seqs, torch_params)
    assert pred.shape == (BATCH, OUTPUT_SIZE)
    assert hn.shape == (BATCH, HIDDEN_SIZE) and cn.shape == (BATCH, HIDDEN_SIZE)
    assert pred0.shape == (OUTPUT_SIZE,)
    assert jnp.allclose(pred, ref, rtol=1e-4, atol=1e-4), (pred, ref)
    assert jnp.allclose(pred0, ref[0], rtol=1e-4, atol=1e-4), (pred0, ref[0])

    print("KERNEL_OK")
</pallas_src>

<mosaic_0001>
module attributes {stable_mosaic.version = 11 : i64} {
  func.func @lstm_kernel(%arg0: i32, %arg1: memref<8x8xf32, #tpu.memory_space<vmem>>, %arg2: memref<8x128xf32, #tpu.memory_space<vmem>>, %arg3: memref<8x128xf32, #tpu.memory_space<vmem>>, %arg4: memref<1x512xf32, #tpu.memory_space<vmem>>, %arg5: memref<128x512xf32, #tpu.memory_space<vmem>>, %arg6: memref<1x512xf32, #tpu.memory_space<vmem>>, %arg7: memref<1x128xf32, #tpu.memory_space<vmem>>, %arg8: memref<1x1xf32, #tpu.memory_space<vmem>>, %arg9: memref<8x1xf32, #tpu.memory_space<vmem>>, %arg10: memref<8x128xf32, #tpu.memory_space<vmem>>, %arg11: memref<8x128xf32, #tpu.memory_space<vmem>>) attributes {dimension_semantics = [#tpu.dimension_semantics<parallel>], iteration_bounds = array<i64: 1>, scalar_prefetch = 0 : i64, scratch_operands = 0 : i64, tpu.core_type = #tpu.core_type<tc>, window_params = [{transform_indices = @transform_0, window_bounds = array<i64: 8, 8>}, {transform_indices = @transform_1, window_bounds = array<i64: 8, 128>}, {transform_indices = @transform_2, window_bounds = array<i64: 8, 128>}, {pipeline_mode = #tpu.pipeline_mode<synchronous>, transform_indices = @transform_3, window_bounds = array<i64: 1, 512>}, {pipeline_mode = #tpu.pipeline_mode<synchronous>, transform_indices = @transform_4, window_bounds = array<i64: 128, 512>}, {pipeline_mode = #tpu.pipeline_mode<synchronous>, transform_indices = @transform_5, window_bounds = array<i64: 1, 512>}, {pipeline_mode = #tpu.pipeline_mode<synchronous>, transform_indices = @transform_6, window_bounds = array<i64: 1, 128>}, {pipeline_mode = #tpu.pipeline_mode<synchronous>, transform_indices = @transform_7, window_bounds = array<i64: 1, 1>}, {transform_indices = @transform_8, window_bounds = array<i64: 8, 1>}, {transform_indices = @transform_9, window_bounds = array<i64: 8, 128>}, {transform_indices = @transform_10, window_bounds = array<i64: 8, 128>}]} {
    %c0 = arith.constant 0 : index
    %c0_0 = arith.constant 0 : index
    %0 = vector.load %arg4[%c0, %c0_0] : memref<1x512xf32, #tpu.memory_space<vmem>>, vector<1x512xf32>
    %c0_1 = arith.constant 0 : index
    %c0_2 = arith.constant 0 : index
    %1 = vector.load %arg6[%c0_1, %c0_2] : memref<1x512xf32, #tpu.memory_space<vmem>>, vector<1x512xf32>
    %c0_3 = arith.constant 0 : index
    %c0_4 = arith.constant 0 : index
    %2 = vector.load %arg5[%c0_3, %c0_4] : memref<128x512xf32, #tpu.memory_space<vmem>>, vector<128x512xf32>
    %3 = arith.truncf %2 : vector<128x512xf32> to vector<128x512xbf16>
    %c0_5 = arith.constant 0 : index
    %c0_6 = arith.constant 0 : index
    %4 = vector.load %arg2[%c0_5, %c0_6] : memref<8x128xf32, #tpu.memory_space<vmem>>, vector<8x128xf32>
    %c0_7 = arith.constant 0 : index
    %c0_8 = arith.constant 0 : index
    %5 = vector.load %arg3[%c0_7, %c0_8] : memref<8x128xf32, #tpu.memory_space<vmem>>, vector<8x128xf32>
    %c0_9 = arith.constant 0 : index
    %c0_10 = arith.constant 0 : index
    %6 = vector.load %arg1[%c0_9, %c0_10] : memref<8x8xf32, #tpu.memory_space<vmem>>, vector<8x1xf32>
    %7 = vector.broadcast %6 : vector<8x1xf32> to vector<8x512xf32>
    %8 = vector.broadcast %0 : vector<1x512xf32> to vector<8x512xf32>
    %9 = arith.mulf %7, %8 : vector<8x512xf32>
    %10 = vector.broadcast %1 : vector<1x512xf32> to vector<8x512xf32>
    %11 = arith.addf %9, %10 : vector<8x512xf32>
    %12 = arith.truncf %4 : vector<8x128xf32> to vector<8x128xbf16>
    %cst = arith.constant dense<0.000000e+00> : vector<8x512xf32>
    %13 = tpu.matmul %12, %3, %cst {dimension_numbers = #tpu.dot_dimension_numbers<[1], [0], [0], [1], [0, 0, 1, 1], [], []>} : vector<8x128xbf16>, vector<128x512xbf16>, vector<8x512xf32> -> vector<8x512xf32>
    %14 = arith.addf %11, %13 : vector<8x512xf32>
    %15 = vector.extract_strided_slice %14 {offsets = [0, 0], sizes = [8, 384], strides = [1, 1]} : vector<8x512xf32> to vector<8x384xf32>
    %16 = arith.negf %15 : vector<8x384xf32>
    %17 = math.exp %16 : vector<8x384xf32>
    %cst_11 = arith.constant 1.000000e+00 : f32
    %18 = vector.broadcast %cst_11 : f32 to vector<8x384xf32>
    %19 = arith.addf %18, %17 : vector<8x384xf32>
    %20 = arith.divf %18, %19 : vector<8x384xf32>
    %21 = vector.extract_strided_slice %14 {offsets = [0, 384], sizes = [8, 128], strides = [1, 1]} : vector<8x512xf32> to vector<8x128xf32>
    %22 = math.tanh %21 : vector<8x128xf32>
    %23 = vector.extract_strided_slice %20 {offsets = [0, 0], sizes = [8, 128], strides = [1, 1]} : vector<8x384xf32> to vector<8x128xf32>
    %24 = vector.extract_strided_slice %20 {offsets = [0, 128], sizes = [8, 128], strides = [1, 1]} : vector<8x384xf32> to vector<8x128xf32>
    %25 = vector.extract_strided_slice %20 {offsets = [0, 256], sizes = [8, 128], strides = [1, 1]} : vector<8x384xf32> to vector<8x128xf32>
    %26 = arith.mulf %24, %5 : vector<8x128xf32>
    %27 = arith.mulf %23, %22 : vector<8x128xf32>
    %28 = arith.addf %26, %27 : vector<8x128xf32>
    %29 = math.tanh %28 : vector<8x128xf32>
    %30 = arith.mulf %25, %29 : vector<8x128xf32>
    %c0_12 = arith.constant 0 : index
    %c1 = arith.constant 1 : index
    %31 = vector.load %arg1[%c0_12, %c1] : memref<8x8xf32, #tpu.memory_space<vmem>>, vector<8x1xf32>
    %32 = vector.broadcast %31 : vector<8x1xf32> to vector<8x512xf32>
    %33 = vector.broadcast %0 : vector<1x512xf32> to vector<8x512xf32>
    %34 = arith.mulf %32, %33 : vector<8x512xf32>
    %35 = vector.broadcast %1 : vector<1x512xf32> to vector<8x512xf32>
    %36 = arith.addf %34, %35 : vector<8x512xf32>
    %37 = arith.truncf %30 : vector<8x128xf32> to vector<8x128xbf16>
    %cst_13 = arith.constant dense<0.000000e+00> : vector<8x512xf32>
    %38 = tpu.matmul %37, %3, %cst_13 {dimension_numbers = #tpu.dot_dimension_numbers<[1], [0], [0], [1], [0, 0, 1, 1], [], []>} : vector<8x128xbf16>, vector<128x512xbf16>, vector<8x512xf32> -> vector<8x512xf32>
    %39 = arith.addf %36, %38 : vector<8x512xf32>
    %40 = vector.extract_strided_slice %39 {offsets = [0, 0], sizes = [8, 384], strides = [1, 1]} : vector<8x512xf32> to vector<8x384xf32>
    %41 = arith.negf %40 : vector<8x384xf32>
    %42 = math.exp %41 : vector<8x384xf32>
    %cst_14 = arith.constant 1.000000e+00 : f32
    %43 = vector.broadcast %cst_14 : f32 to vector<8x384xf32>
    %44 = arith.addf %43, %42 : vector<8x384xf32>
    %45 = arith.divf %43, %44 : vector<8x384xf32>
    %46 = vector.extract_strided_slice %39 {offsets = [0, 384], sizes = [8, 128], strides = [1, 1]} : vector<8x512xf32> to vector<8x128xf32>
    %47 = math.tanh %46 : vector<8x128xf32>
    %48 = vector.extract_strided_slice %45 {offsets = [0, 0], sizes = [8, 128], strides = [1, 1]} : vector<8x384xf32> to vector<8x128xf32>
    %49 = vector.extract_strided_slice %45 {offsets = [0, 128], sizes = [8, 128], strides = [1, 1]} : vector<8x384xf32> to vector<8x128xf32>
    %50 = vector.extract_strided_slice %45 {offsets = [0, 256], sizes = [8, 128], strides = [1, 1]} : vector<8x384xf32> to vector<8x128xf32>
    %51 = arith.mulf %49, %28 : vector<8x128xf32>
    %52 = arith.mulf %48, %47 : vector<8x128xf32>
    %53 = arith.addf %51, %52 : vector<8x128xf32>
    %54 = math.tanh %53 : vector<8x128xf32>
    %55 = arith.mulf %50, %54 : vector<8x128xf32>
    %c0_15 = arith.constant 0 : index
    %c2 = arith.constant 2 : index
    %56 = vector.load %arg1[%c0_15, %c2] : memref<8x8xf32, #tpu.memory_space<vmem>>, vector<8x1xf32>
    %57 = vector.broadcast %56 : vector<8x1xf32> to vector<8x512xf32>
    %58 = vector.broadcast %0 : vector<1x512xf32> to vector<8x512xf32>
    %59 = arith.mulf %57, %58 : vector<8x512xf32>
    %60 = vector.broadcast %1 : vector<1x512xf32> to vector<8x512xf32>
    %61 = arith.addf %59, %60 : vector<8x512xf32>
    %62 = arith.truncf %55 : vector<8x128xf32> to vector<8x128xbf16>
    %cst_16 = arith.constant dense<0.000000e+00> : vector<8x512xf32>
    %63 = tpu.matmul %62, %3, %cst_16 {dimension_numbers = #tpu.dot_dimension_numbers<[1], [0], [0], [1], [0, 0, 1, 1], [], []>} : vector<8x128xbf16>, vector<128x512xbf16>, vector<8x512xf32> -> vector<8x512xf32>
    %64 = arith.addf %61, %63 : vector<8x512xf32>
    %65 = vector.extract_strided_slice %64 {offsets = [0, 0], sizes = [8, 384], strides = [1, 1]} : vector<8x512xf32> to vector<8x384xf32>
    %66 = arith.negf %65 : vector<8x384xf32>
    %67 = math.exp %66 : vector<8x384xf32>
    %cst_17 = arith.constant 1.000000e+00 : f32
    %68 = vector.broadcast %cst_17 : f32 to vector<8x384xf32>
    %69 = arith.addf %68, %67 : vector<8x384xf32>
    %70 = arith.divf %68, %69 : vector<8x384xf32>
    %71 = vector.extract_strided_slice %64 {offsets = [0, 384], sizes = [8, 128], strides = [1, 1]} : vector<8x512xf32> to vector<8x128xf32>
    %72 = math.tanh %71 : vector<8x128xf32>
    %73 = vector.extract_strided_slice %70 {offsets = [0, 0], sizes = [8, 128], strides = [1, 1]} : vector<8x384xf32> to vector<8x128xf32>
    %74 = vector.extract_strided_slice %70 {offsets = [0, 128], sizes = [8, 128], strides = [1, 1]} : vector<8x384xf32> to vector<8x128xf32>
    %75 = vector.extract_strided_slice %70 {offsets = [0, 256], sizes = [8, 128], strides = [1, 1]} : vector<8x384xf32> to vector<8x128xf32>
    %76 = arith.mulf %74, %53 : vector<8x128xf32>
    %77 = arith.mulf %73, %72 : vector<8x128xf32>
    %78 = arith.addf %76, %77 : vector<8x128xf32>
    %79 = math.tanh %78 : vector<8x128xf32>
    %80 = arith.mulf %75, %79 : vector<8x128xf32>
    %c0_18 = arith.constant 0 : index
    %c3 = arith.constant 3 : index
    %81 = vector.load %arg1[%c0_18, %c3] : memref<8x8xf32, #tpu.memory_space<vmem>>, vector<8x1xf32>
    %82 = vector.broadcast %81 : vector<8x1xf32> to vector<8x512xf32>
    %83 = vector.broadcast %0 : vector<1x512xf32> to vector<8x512xf32>
    %84 = arith.mulf %82, %83 : vector<8x512xf32>
    %85 = vector.broadcast %1 : vector<1x512xf32> to vector<8x512xf32>
    %86 = arith.addf %84, %85 : vector<8x512xf32>
    %87 = arith.truncf %80 : vector<8x128xf32> to vector<8x128xbf16>
    %cst_19 = arith.constant dense<0.000000e+00> : vector<8x512xf32>
    %88 = tpu.matmul %87, %3, %cst_19 {dimension_numbers = #tpu.dot_dimension_numbers<[1], [0], [0], [1], [0, 0, 1, 1], [], []>} : vector<8x128xbf16>, vector<128x512xbf16>, vector<8x512xf32> -> vector<8x512xf32>
    %89 = arith.addf %86, %88 : vector<8x512xf32>
    %90 = vector.extract_strided_slice %89 {offsets = [0, 0], sizes = [8, 384], strides = [1, 1]} : vector<8x512xf32> to vector<8x384xf32>
    %91 = arith.negf %90 : vector<8x384xf32>
    %92 = math.exp %91 : vector<8x384xf32>
    %cst_20 = arith.constant 1.000000e+00 : f32
    %93 = vector.broadcast %cst_20 : f32 to vector<8x384xf32>
    %94 = arith.addf %93, %92 : vector<8x384xf32>
    %95 = arith.divf %93, %94 : vector<8x384xf32>
    %96 = vector.extract_strided_slice %89 {offsets = [0, 384], sizes = [8, 128], strides = [1, 1]} : vector<8x512xf32> to vector<8x128xf32>
    %97 = math.tanh %96 : vector<8x128xf32>
    %98 = vector.extract_strided_slice %95 {offsets = [0, 0], sizes = [8, 128], strides = [1, 1]} : vector<8x384xf32> to vector<8x128xf32>
    %99 = vector.extract_strided_slice %95 {offsets = [0, 128], sizes = [8, 128], strides = [1, 1]} : vector<8x384xf32> to vector<8x128xf32>
    %100 = vector.extract_strided_slice %95 {offsets = [0, 256], sizes = [8, 128], strides = [1, 1]} : vector<8x384xf32> to vector<8x128xf32>
    %101 = arith.mulf %99, %78 : vector<8x128xf32>
    %102 = arith.mulf %98, %97 : vector<8x128xf32>
    %103 = arith.addf %101, %102 : vector<8x128xf32>
    %104 = math.tanh %103 : vector<8x128xf32>
    %105 = arith.mulf %100, %104 : vector<8x128xf32>
    %c0_21 = arith.constant 0 : index
    %c4 = arith.constant 4 : index
    %106 = vector.load %arg1[%c0_21, %c4] : memref<8x8xf32, #tpu.memory_space<vmem>>, vector<8x1xf32>
    %107 = vector.broadcast %106 : vector<8x1xf32> to vector<8x512xf32>
    %108 = vector.broadcast %0 : vector<1x512xf32> to vector<8x512xf32>
    %109 = arith.mulf %107, %108 : vector<8x512xf32>
    %110 = vector.broadcast %1 : vector<1x512xf32> to vector<8x512xf32>
    %111 = arith.addf %109, %110 : vector<8x512xf32>
    %112 = arith.truncf %105 : vector<8x128xf32> to vector<8x128xbf16>
    %cst_22 = arith.constant dense<0.000000e+00> : vector<8x512xf32>
    %113 = tpu.matmul %112, %3, %cst_22 {dimension_numbers = #tpu.dot_dimension_numbers<[1], [0], [0], [1], [0, 0, 1, 1], [], []>} : vector<8x128xbf16>, vector<128x512xbf16>, vector<8x512xf32> -> vector<8x512xf32>
    %114 = arith.addf %111, %113 : vector<8x512xf32>
    %115 = vector.extract_strided_slice %114 {offsets = [0, 0], sizes = [8, 384], strides = [1, 1]} : vector<8x512xf32> to vector<8x384xf32>
    %116 = arith.negf %115 : vector<8x384xf32>
    %117 = math.exp %116 : vector<8x384xf32>
    %cst_23 = arith.constant 1.000000e+00 : f32
    %118 = vector.broadcast %cst_23 : f32 to vector<8x384xf32>
    %119 = arith.addf %118, %117 : vector<8x384xf32>
    %120 = arith.divf %118, %119 : vector<8x384xf32>
    %121 = vector.extract_strided_slice %114 {offsets = [0, 384], sizes = [8, 128], strides = [1, 1]} : vector<8x512xf32> to vector<8x128xf32>
    %122 = math.tanh %121 : vector<8x128xf32>
    %123 = vector.extract_strided_slice %120 {offsets = [0, 0], sizes = [8, 128], strides = [1, 1]} : vector<8x384xf32> to vector<8x128xf32>
    %124 = vector.extract_strided_slice %120 {offsets = [0, 128], sizes = [8, 128], strides = [1, 1]} : vector<8x384xf32> to vector<8x128xf32>
    %125 = vector.extract_strided_slice %120 {offsets = [0, 256], sizes = [8, 128], strides = [1, 1]} : vector<8x384xf32> to vector<8x128xf32>
    %126 = arith.mulf %124, %103 : vector<8x128xf32>
    %127 = arith.mulf %123, %122 : vector<8x128xf32>
    %128 = arith.addf %126, %127 : vector<8x128xf32>
    %129 = math.tanh %128 : vector<8x128xf32>
    %130 = arith.mulf %125, %129 : vector<8x128xf32>
    %c0_24 = arith.constant 0 : index
    %c5 = arith.constant 5 : index
    %131 = vector.load %arg1[%c0_24, %c5] : memref<8x8xf32, #tpu.memory_space<vmem>>, vector<8x1xf32>
    %132 = vector.broadcast %131 : vector<8x1xf32> to vector<8x512xf32>
    %133 = vector.broadcast %0 : vector<1x512xf32> to vector<8x512xf32>
    %134 = arith.mulf %132, %133 : vector<8x512xf32>
    %135 = vector.broadcast %1 : vector<1x512xf32> to vector<8x512xf32>
    %136 = arith.addf %134, %135 : vector<8x512xf32>
    %137 = arith.truncf %130 : vector<8x128xf32> to vector<8x128xbf16>
    %cst_25 = arith.constant dense<0.000000e+00> : vector<8x512xf32>
    %138 = tpu.matmul %137, %3, %cst_25 {dimension_numbers = #tpu.dot_dimension_numbers<[1], [0], [0], [1], [0, 0, 1, 1], [], []>} : vector<8x128xbf16>, vector<128x512xbf16>, vector<8x512xf32> -> vector<8x512xf32>
    %139 = arith.addf %136, %138 : vector<8x512xf32>
    %140 = vector.extract_strided_slice %139 {offsets = [0, 0], sizes = [8, 384], strides = [1, 1]} : vector<8x512xf32> to vector<8x384xf32>
    %141 = arith.negf %140 : vector<8x384xf32>
    %142 = math.exp %141 : vector<8x384xf32>
    %cst_26 = arith.constant 1.000000e+00 : f32
    %143 = vector.broadcast %cst_26 : f32 to vector<8x384xf32>
    %144 = arith.addf %143, %142 : vector<8x384xf32>
    %145 = arith.divf %143, %144 : vector<8x384xf32>
    %146 = vector.extract_strided_slice %139 {offsets = [0, 384], sizes = [8, 128], strides = [1, 1]} : vector<8x512xf32> to vector<8x128xf32>
    %147 = math.tanh %146 : vector<8x128xf32>
    %148 = vector.extract_strided_slice %145 {offsets = [0, 0], sizes = [8, 128], strides = [1, 1]} : vector<8x384xf32> to vector<8x128xf32>
    %149 = vector.extract_strided_slice %145 {offsets = [0, 128], sizes = [8, 128], strides = [1, 1]} : vector<8x384xf32> to vector<8x128xf32>
    %150 = vector.extract_strided_slice %145 {offsets = [0, 256], sizes = [8, 128], strides = [1, 1]} : vector<8x384xf32> to vector<8x128xf32>
    %151 = arith.mulf %149, %128 : vector<8x128xf32>
    %152 = arith.mulf %148, %147 : vector<8x128xf32>
    %153 = arith.addf %151, %152 : vector<8x128xf32>
    %154 = math.tanh %153 : vector<8x128xf32>
    %155 = arith.mulf %150, %154 : vector<8x128xf32>
    %c0_27 = arith.constant 0 : index
    %c6 = arith.constant 6 : index
    %156 = vector.load %arg1[%c0_27, %c6] : memref<8x8xf32, #tpu.memory_space<vmem>>, vector<8x1xf32>
    %157 = vector.broadcast %156 : vector<8x1xf32> to vector<8x512xf32>
    %158 = vector.broadcast %0 : vector<1x512xf32> to vector<8x512xf32>
    %159 = arith.mulf %157, %158 : vector<8x512xf32>
    %160 = vector.broadcast %1 : vector<1x512xf32> to vector<8x512xf32>
    %161 = arith.addf %159, %160 : vector<8x512xf32>
    %162 = arith.truncf %155 : vector<8x128xf32> to vector<8x128xbf16>
    %cst_28 = arith.constant dense<0.000000e+00> : vector<8x512xf32>
    %163 = tpu.matmul %162, %3, %cst_28 {dimension_numbers = #tpu.dot_dimension_numbers<[1], [0], [0], [1], [0, 0, 1, 1], [], []>} : vector<8x128xbf16>, vector<128x512xbf16>, vector<8x512xf32> -> vector<8x512xf32>
    %164 = arith.addf %161, %163 : vector<8x512xf32>
    %165 = vector.extract_strided_slice %164 {offsets = [0, 0], sizes = [8, 384], strides = [1, 1]} : vector<8x512xf32> to vector<8x384xf32>
    %166 = arith.negf %165 : vector<8x384xf32>
    %167 = math.exp %166 : vector<8x384xf32>
    %cst_29 = arith.constant 1.000000e+00 : f32
    %168 = vector.broadcast %cst_29 : f32 to vector<8x384xf32>
    %169 = arith.addf %168, %167 : vector<8x384xf32>
    %170 = arith.divf %168, %169 : vector<8x384xf32>
    %171 = vector.extract_strided_slice %164 {offsets = [0, 384], sizes = [8, 128], strides = [1, 1]} : vector<8x512xf32> to vector<8x128xf32>
    %172 = math.tanh %171 : vector<8x128xf32>
    %173 = vector.extract_strided_slice %170 {offsets = [0, 0], sizes = [8, 128], strides = [1, 1]} : vector<8x384xf32> to vector<8x128xf32>
    %174 = vector.extract_strided_slice %170 {offsets = [0, 128], sizes = [8, 128], strides = [1, 1]} : vector<8x384xf32> to vector<8x128xf32>
    %175 = vector.extract_strided_slice %170 {offsets = [0, 256], sizes = [8, 128], strides = [1, 1]} : vector<8x384xf32> to vector<8x128xf32>
    %176 = arith.mulf %174, %153 : vector<8x128xf32>
    %177 = arith.mulf %173, %172 : vector<8x128xf32>
    %178 = arith.addf %176, %177 : vector<8x128xf32>
    %179 = math.tanh %178 : vector<8x128xf32>
    %180 = arith.mulf %175, %179 : vector<8x128xf32>
    %c0_30 = arith.constant 0 : index
    %c7 = arith.constant 7 : index
    %181 = vector.load %arg1[%c0_30, %c7] : memref<8x8xf32, #tpu.memory_space<vmem>>, vector<8x1xf32>
    %182 = vector.broadcast %181 : vector<8x1xf32> to vector<8x512xf32>
    %183 = vector.broadcast %0 : vector<1x512xf32> to vector<8x512xf32>
    %184 = arith.mulf %182, %183 : vector<8x512xf32>
    %185 = vector.broadcast %1 : vector<1x512xf32> to vector<8x512xf32>
    %186 = arith.addf %184, %185 : vector<8x512xf32>
    %187 = arith.truncf %180 : vector<8x128xf32> to vector<8x128xbf16>
    %cst_31 = arith.constant dense<0.000000e+00> : vector<8x512xf32>
    %188 = tpu.matmul %187, %3, %cst_31 {dimension_numbers = #tpu.dot_dimension_numbers<[1], [0], [0], [1], [0, 0, 1, 1], [], []>} : vector<8x128xbf16>, vector<128x512xbf16>, vector<8x512xf32> -> vector<8x512xf32>
    %189 = arith.addf %186, %188 : vector<8x512xf32>
    %190 = vector.extract_strided_slice %189 {offsets = [0, 0], sizes = [8, 384], strides = [1, 1]} : vector<8x512xf32> to vector<8x384xf32>
    %191 = arith.negf %190 : vector<8x384xf32>
    %192 = math.exp %191 : vector<8x384xf32>
    %cst_32 = arith.constant 1.000000e+00 : f32
    %193 = vector.broadcast %cst_32 : f32 to vector<8x384xf32>
    %194 = arith.addf %193, %192 : vector<8x384xf32>
    %195 = arith.divf %193, %194 : vector<8x384xf32>
    %196 = vector.extract_strided_slice %189 {offsets = [0, 384], sizes = [8, 128], strides = [1, 1]} : vector<8x512xf32> to vector<8x128xf32>
    %197 = math.tanh %196 : vector<8x128xf32>
    %198 = vector.extract_strided_slice %195 {offsets = [0, 0], sizes = [8, 128], strides = [1, 1]} : vector<8x384xf32> to vector<8x128xf32>
    %199 = vector.extract_strided_slice %195 {offsets = [0, 128], sizes = [8, 128], strides = [1, 1]} : vector<8x384xf32> to vector<8x128xf32>
    %200 = vector.extract_strided_slice %195 {offsets = [0, 256], sizes = [8, 128], strides = [1, 1]} : vector<8x384xf32> to vector<8x128xf32>
    %201 = arith.mulf %199, %178 : vector<8x128xf32>
    %202 = arith.mulf %198, %197 : vector<8x128xf32>
    %203 = arith.addf %201, %202 : vector<8x128xf32>
    %204 = math.tanh %203 : vector<8x128xf32>
    %205 = arith.mulf %200, %204 : vector<8x128xf32>
    %c0_33 = arith.constant 0 : index
    %c0_34 = arith.constant 0 : index
    %206 = vector.load %arg7[%c0_33, %c0_34] : memref<1x128xf32, #tpu.memory_space<vmem>>, vector<1x128xf32>
    %207 = vector.broadcast %206 : vector<1x128xf32> to vector<8x128xf32>
    %208 = arith.mulf %205, %207 : vector<8x128xf32>
    %cst_35 = arith.constant dense<0.000000e+00> : vector<8xf32>
    %209 = vector.multi_reduction <add>, %208, %cst_35 [1] : vector<8x128xf32> to vector<8xf32>
    %210 = vector.shape_cast %209 : vector<8xf32> to vector<8x1xf32>
    %c0_36 = arith.constant 0 : index
    %c0_37 = arith.constant 0 : index
    %211 = vector.load %arg8[%c0_36, %c0_37] : memref<1x1xf32, #tpu.memory_space<vmem>>, vector<1x1xf32>
    %212 = vector.broadcast %211 : vector<1x1xf32> to vector<8x1xf32>
    %213 = arith.addf %210, %212 : vector<8x1xf32>
    %c0_38 = arith.constant 0 : index
    %c0_39 = arith.constant 0 : index
    %214 = vector.load %arg9[%c0_38, %c0_39] : memref<8x1xf32, #tpu.memory_space<vmem>>, vector<8x1xf32>
    tpu.vector_store %arg9[%c0_38, %c0_39], %213 {strides = array<i32>} : memref<8x1xf32, #tpu.memory_space<vmem>>, vector<8x1xf32>,
    %c0_40 = arith.constant 0 : index
    %c0_41 = arith.constant 0 : index
    %215 = vector.load %arg10[%c0_40, %c0_41] : memref<8x128xf32, #tpu.memory_space<vmem>>, vector<8x128xf32>
    tpu.vector_store %arg10[%c0_40, %c0_41], %205 {strides = array<i32>} : memref<8x128xf32, #tpu.memory_space<vmem>>, vector<8x128xf32>,
    %c0_42 = arith.constant 0 : index
    %c0_43 = arith.constant 0 : index
    %216 = vector.load %arg11[%c0_42, %c0_43] : memref<8x128xf32, #tpu.memory_space<vmem>>, vector<8x128xf32>
    tpu.vector_store %arg11[%c0_42, %c0_43], %203 {strides = array<i32>} : memref<8x128xf32, #tpu.memory_space<vmem>>, vector<8x128xf32>,
    return
  }
  func.func @transform_0(%arg0: i32) -> (i32, i32) {
    %c0_i32 = arith.constant 0 : i32
    %c0_i32_0 = arith.constant 0 : i32
    return %arg0, %c0_i32 : i32, i32
  }
  func.func @transform_1(%arg0: i32) -> (i32, i32) {
    %c0_i32 = arith.constant 0 : i32
    %c0_i32_0 = arith.constant 0 : i32
    return %arg0, %c0_i32 : i32, i32
  }
  func.func @transform_2(%arg0: i32) -> (i32, i32) {
    %c0_i32 = arith.constant 0 : i32
    %c0_i32_0 = arith.constant 0 : i32
    return %arg0, %c0_i32 : i32, i32
  }
  func.func @transform_3(%arg0: i32) -> (i32, i32) {
    %c0_i32 = arith.constant 0 : i32
    %c0_i32_0 = arith.constant 0 : i32
    %c0_i32_1 = arith.constant 0 : i32
    return %c0_i32, %c0_i32_0 : i32, i32
  }
  func.func @transform_4(%arg0: i32) -> (i32, i32) {
    %c0_i32 = arith.constant 0 : i32
    %c0_i32_0 = arith.constant 0 : i32
    %c0_i32_1 = arith.constant 0 : i32
    return %c0_i32, %c0_i32_0 : i32, i32
  }
  func.func @transform_5(%arg0: i32) -> (i32, i32) {
    %c0_i32 = arith.constant 0 : i32
    %c0_i32_0 = arith.constant 0 : i32
    %c0_i32_1 = arith.constant 0 : i32
    return %c0_i32, %c0_i32_0 : i32, i32
  }
  func.func @transform_6(%arg0: i32) -> (i32, i32) {
    %c0_i32 = arith.constant 0 : i32
    %c0_i32_0 = arith.constant 0 : i32
    %c0_i32_1 = arith.constant 0 : i32
    return %c0_i32, %c0_i32_0 : i32, i32
  }
  func.func @transform_7(%arg0: i32) -> (i32, i32) {
    %c0_i32 = arith.constant 0 : i32
    %c0_i32_0 = arith.constant 0 : i32
    %c0_i32_1 = arith.constant 0 : i32
    return %c0_i32, %c0_i32_0 : i32, i32
  }
  func.func @transform_8(%arg0: i32) -> (i32, i32) {
    %c0_i32 = arith.constant 0 : i32
    %c0_i32_0 = arith.constant 0 : i32
    return %arg0, %c0_i32 : i32, i32
  }
  func.func @transform_9(%arg0: i32) -> (i32, i32) {
    %c0_i32 = arith.constant 0 : i32
    %c0_i32_0 = arith.constant 0 : i32
    return %arg0, %c0_i32 : i32, i32
  }
  func.func @transform_10(%arg0: i32) -> (i32, i32) {
    %c0_i32 = arith.constant 0 : i32
    %c0_i32_0 = arith.constant 0 : i32
    return %arg0, %c0_i32 : i32, i32
  }
}

</mosaic_0001>

<bundles_post_ra>
// kernel: lstm_forward_batched.1
= control target key start
LH: loop header
LB: loop body
LE: loop exit
PB: predicated region body
PF: predicated region fallthrough
CT: control target
= control target key end

     0   :  { %s1975_s0 = inlined_call_operand.vmem [shape: f32[8,8], index: 0, kind: input, shape index: {}]   ;;  %s1976_s1 = inlined_call_operand.vmem [shape: f32[8,128], index: 1, kind: input, shape index: {}]   ;;  %s1977_s2 = inlined_call_operand.vmem [shape: f32[8,128], index: 2, kind: input, shape index: {}]   ;;  %s1978_s3 = inlined_call_operand.vmem [shape: f32[1,512], index: 3, kind: input, shape index: {}]   ;;  %s1979_s4 = inlined_call_operand.hbm [shape: f32[128,512], index: 4, kind: input, shape index: {}]   ;;  %s1980_s5 = inlined_call_operand.vmem [shape: f32[1,512], index: 5, kind: input, shape index: {}]   ;;  %s1981_s6 = inlined_call_operand.vmem [shape: f32[1,128], index: 6, kind: input, shape index: {}]   ;;  %s1982_s7 = inlined_call_operand.<no memory space> [shape: f32[1,1], index: 7, kind: input, shape index: {}]   ;;  %s1983_s8 = inlined_call_operand.vmem [shape: f32[8,1], index: 8, kind: output, shape index: {0}]   ;;  %s1984_s9 = inlined_call_operand.vmem [shape: f32[8,128], index: 9, kind: output, shape index: {1}]   ;;  %s1985_s10 = inlined_call_operand.vmem [shape: f32[8,128], index: 10, kind: output, shape index: {2}]  }
   0x1   :  { %v16_v0 = vstv %s1982_s7 }
   0x2   :  { %17 = vst [vmem:[#allocation2] sm:$0x1] %v16_v0 }
   0x3   :  { %18 = vsyncpa [#allocation4], 0  ;;  %s1411_s15 = smov [#allocation3]   ;;  %s1387_s19 = scalar_lea.hbm %s1979_s4, 8192 }
   0x4   :  { %s32_s16 = sshll.u32 %s1411_s15, 4  ;;  %p1388_p0 = scmp.ne.s32.totalorder %s1979_s4, %s1387_s19  ;;  %s33_s16 = int_to_ptr.vmem [resolvable:$true] %s32_s16 }
   0x5   :  { %p1391_p1 = scmp.lt.u32.totalorder %s1387_s19, %s1979_s4 }
   0x7   :  { %p1393_p2 = pnand %p1391_p1, %p1388_p0 }
   0x9   :  { %1396 = shalt.err (!%p1393_p2)
}
   0xa   :  { %s1397_s7 = scalar_lea.vmem %s33_s16, 8192  ;;  %p1402_p4 = scmp.lt.s32.totalorder %s33_s16, %s33_s16 }
   0xb   :  { %p1398_p3 = scmp.ne.s32.totalorder %s33_s16, %s1397_s7  ;;  %p1403_p5 = scmp.lt.s32.totalorder %s1397_s7, %s1397_s7 }
   0xd   :  { %p1404_p6 = por %p1403_p5, %p1402_p4 }
   0xf   :  { %p1405_p7 = pnand %p1404_p6, %p1398_p3 }
  0x11   :  { %1408 = shalt.err (!%p1405_p7)
}
  0x12   :  { %s1412_s24 = smov 512   ;;  %s1413_s25 = smov 32  }
  0x13   :  { %38 = dma.hbm_to_vmem [thread:$0]  %s1979_s4, 8192, %s33_s16, [#allocation4], %s1412_s24, %s1412_s24, %s1413_s25  }
  0x14   :  { %1409 = dma.done.wait [#allocation4], 8192  }
  0x15   :  { %1410 = vsyncadd [#allocation4], 4294959104  ;;  %v1986_v1 = vmov 0   ;;  %v52_v2 = vld [vmem:[#allocation3 + $0x8] sm:$0xff]  ;;  %v54_v4 = vld [vmem:[#allocation3 + $0x18] sm:$0xff]  ;;  %vm1195_vm0 = vcmask 7168  }
  0x16   :  { %238 = vmatprep.mubr.bf16.mxu0 %v1986_v1  ;;  %279 = vmatprep.mubr.bf16.mxu1 %v1986_v1  ;;  %v56_v3 = vld [vmem:[#allocation3 + $0x28] sm:$0xff]  ;;  %v58_v6 = vld [vmem:[#allocation3 + $0x38] sm:$0xff]  ;;  %v51_v7 = vld [vmem:[#allocation3] sm:$0xff] }
  0x17   :  { %1249 = vset.pattern.permute.xlu0 %v1986_v1  ;;  %v1495_v5 = vpack.c.bf16 %v56_v3, %v52_v2  ;;  %v55_v8 = vld [vmem:[#allocation3 + $0x20] sm:$0xff]  ;;  %v1497_v9 = vpack.c.bf16 %v58_v6, %v54_v4  ;;  %v53_v11 = vld [vmem:[#allocation3 + $0x10] sm:$0xff]  ;;  %v60_v13 = vld [vmem:[#allocation3 + $0x48] sm:$0xff] }
  0x18   :  { %v1499_v10 = vpack.c.bf16 %v55_v8, %v51_v7  ;;  %v57_v12 = vld [vmem:[#allocation3 + $0x30] sm:$0xff]  ;;  %v64_v15 = vld [vmem:[#allocation3 + $0x68] sm:$0xff]  ;;  %v62_v16 = vld [vmem:[#allocation3 + $0x58] sm:$0xff] }
  0x19   :  { %206 = vmatprep.subr.bf16.mxu0 %v1495_v5  ;;  %v1502_v14 = vpack.c.bf16 %v57_v12, %v53_v11  ;;  %v66_v17 = vld [vmem:[#allocation3 + $0x78] sm:$0xff]  ;;  %247 = vmatprep.subr.bf16.mxu1 %v1497_v9  ;;  %v1506_v18 = vpack.c.bf16 %v64_v15, %v60_v13  ;;  %v59_v20 = vld [vmem:[#allocation3 + $0x40] sm:$0xff]  ;;  %v61_v22 = vld [vmem:[#allocation3 + $0x50] sm:$0xff] }
  0x1a   :  { %207 = vmatpush1.bf16.msra.mxu0 %v1499_v10  ;;  %v1508_v19 = vpack.c.bf16 %v66_v17, %v62_v16  ;;  %v63_v21 = vld [vmem:[#allocation3 + $0x60] sm:$0xff]  ;;  %v65_v24 = vld [vmem:[#allocation3 + $0x70] sm:$0xff]  ;;  %v68_v25 = vld [vmem:[#allocation3 + $0x88] sm:$0xff] }
  0x1b   :  { %248 = vmatpush1.bf16.msra.mxu1 %v1502_v14  ;;  %v1511_v23 = vpack.c.bf16 %v63_v21, %v59_v20  ;;  %v72_v26 = vld [vmem:[#allocation3 + $0xa8] sm:$0xff]  ;;  %208 = vmatprep.subr.bf16.mxu0 %v1506_v18  ;;  %v1515_v27 = vpack.c.bf16 %v65_v24, %v61_v22  ;;  %v70_v29 = vld [vmem:[#allocation3 + $0x98] sm:$0xff]  ;;  %v67_v31 = vld [vmem:[#allocation3 + $0x80] sm:$0xff] }
  0x1c   :  { %249 = vmatprep.subr.bf16.mxu1 %v1508_v19  ;;  %v1517_v28 = vpack.c.bf16 %v72_v26, %v68_v25  ;;  %v74_v30 = vld [vmem:[#allocation3 + $0xb8] sm:$0xff]  ;;  %v71_v33 = vld [vmem:[#allocation3 + $0xa0] sm:$0xff]  ;;  %v69_v34 = vld [vmem:[#allocation3 + $0x90] sm:$0xff] }
  0x1d   :  { %v1519_v32 = vpack.c.bf16 %v74_v30, %v70_v29  ;;  %v73_v35 = vld [vmem:[#allocation3 + $0xb0] sm:$0xff]  ;;  %v1522_v36 = vpack.c.bf16 %v71_v33, %v67_v31  ;;  %v76_v37 = vld [vmem:[#allocation3 + $0xc8] sm:$0xff]  ;;  %v78_v39 = vld [vmem:[#allocation3 + $0xd8] sm:$0xff] }
  0x1e   :  { %209 = vmatpush1.bf16.msra.mxu0 %v1511_v23  ;;  %v80_v38 = vld [vmem:[#allocation3 + $0xe8] sm:$0xff]  ;;  %v1526_v40 = vpack.c.bf16 %v73_v35, %v69_v34  ;;  %v82_v42 = vld [vmem:[#allocation3 + $0xf8] sm:$0xff]  ;;  %v75_v43 = vld [vmem:[#allocation3 + $0xc0] sm:$0xff] }
  0x1f   :  { %250 = vmatpush1.bf16.msra.mxu1 %v1515_v27  ;;  %210 = vmatprep.subr.bf16.mxu0 %v1517_v28  ;;  %v1528_v41 = vpack.c.bf16 %v80_v38, %v76_v37  ;;  %v79_v44 = vld [vmem:[#allocation3 + $0xe0] sm:$0xff]  ;;  %v1531_v45 = vpack.c.bf16 %v82_v42, %v78_v39  ;;  %v77_v46 = vld [vmem:[#allocation3 + $0xd0] sm:$0xff]  ;;  %v84_v48 = vld [vmem:[#allocation3 + $0x108] sm:$0xff] }
  0x20   :  { %251 = vmatprep.subr.bf16.mxu1 %v1519_v32  ;;  %v81_v47 = vld [vmem:[#allocation3 + $0xf0] sm:$0xff]  ;;  %v88_v49 = vld [vmem:[#allocation3 + $0x128] sm:$0xff]  ;;  %v86_v50 = vld [vmem:[#allocation3 + $0x118] sm:$0xff]  ;;  %v1534_v52 = vpack.c.bf16 %v79_v44, %v75_v43 }
  0x21   :  { %v90_v51 = vld [vmem:[#allocation3 + $0x138] sm:$0xff]  ;;  %v1538_v53 = vpack.c.bf16 %v81_v47, %v77_v46  ;;  %v1540_v54 = vpack.c.bf16 %v88_v49, %v84_v48  ;;  %v83_v55 = vld [vmem:[#allocation3 + $0x100] sm:$0xff]  ;;  %v85_v57 = vld [vmem:[#allocation3 + $0x110] sm:$0xff] }
  0x22   :  { %211 = vmatpush1.bf16.msra.mxu0 %v1522_v36  ;;  %v87_v56 = vld [vmem:[#allocation3 + $0x120] sm:$0xff]  ;;  %v1543_v58 = vpack.c.bf16 %v90_v51, %v86_v50  ;;  %v89_v59 = vld [vmem:[#allocation3 + $0x130] sm:$0xff]  ;;  %v92_v60 = vld [vmem:[#allocation3 + $0x148] sm:$0xff] }
  0x23   :  { %252 = vmatpush1.bf16.msra.mxu1 %v1526_v40  ;;  %212 = vmatprep.subr.bf16.mxu0 %v1528_v41  ;;  %v96_v61 = vld [vmem:[#allocation3 + $0x168] sm:$0xff]  ;;  %v94_v62 = vld [vmem:[#allocation3 + $0x158] sm:$0xff]  ;;  %v1546_v0 = vpack.c.bf16 %v87_v56, %v83_v55  ;;  %v1550_v2 = vpack.c.bf16 %v89_v59, %v85_v57  ;;  %v91_v4 = vld [vmem:[#allocation3 + $0x140] sm:$0xff]  ;;  %v1415_v55 = vmov 1   ;;  %v156_v56 = vlaneseq }
  0x24   :  { %253 = vmatprep.subr.bf16.mxu1 %v1531_v45  ;;  %v98_v63 = vld [vmem:[#allocation3 + $0x178] sm:$0xff]  ;;  %v1552_v3 = vpack.c.bf16 %v96_v61, %v92_v60  ;;  %v95_v6 = vld [vmem:[#allocation3 + $0x160] sm:$0xff]  ;;  %v93_v7 = vld [vmem:[#allocation3 + $0x150] sm:$0xff] }
  0x25   :  { %v1555_v8 = vpack.c.bf16 %v98_v63, %v94_v62  ;;  %v97_v11 = vld [vmem:[#allocation3 + $0x170] sm:$0xff]  ;;  %v100_v12 = vld [vmem:[#allocation3 + $0x188] sm:$0xff]  ;;  %v102_v15 = vld [vmem:[#allocation3 + $0x198] sm:$0xff]  ;;  %v1558_v17 = vpack.c.bf16 %v95_v6, %v91_v4  ;;  %v157_v57 = vshrl.u32 %v156_v56, 7 }
  0x26   :  { %213 = vmatpush1.bf16.msra.mxu0 %v1534_v52  ;;  %v104_v13 = vld [vmem:[#allocation3 + $0x1a8] sm:$0xff]  ;;  %v106_v16 = vld [vmem:[#allocation3 + $0x1b8] sm:$0xff]  ;;  %v99_v20 = vld [vmem:[#allocation3 + $0x180] sm:$0xff]  ;;  %v1562_v21 = vpack.c.bf16 %v97_v11, %v93_v7 }
  0x27   :  { %254 = vmatpush1.bf16.msra.mxu1 %v1538_v53  ;;  %214 = vmatprep.subr.bf16.mxu0 %v1540_v54  ;;  %v1564_v22 = vpack.c.bf16 %v104_v13, %v100_v12  ;;  %v103_v24 = vld [vmem:[#allocation3 + $0x1a0] sm:$0xff]  ;;  %v101_v25 = vld [vmem:[#allocation3 + $0x190] sm:$0xff]  ;;  %v1572_v29 = vpack.c.bf16 %v106_v16, %v102_v15  ;;  %v108_v31 = vld [vmem:[#allocation3 + $0x1c8] sm:$0xff]  ;;  %v158_v59 = vsub.s32 0, %v157_v57  ;;  %v162_v61 = vsub.s32 1, %v157_v57 }
  0x28   :  { %255 = vmatprep.subr.bf16.mxu1 %v1543_v58  ;;  %v1569_v26 = vld [vmem:[%s1975_s0] sm:$0xff]  ;;  %v105_v30 = vld [vmem:[#allocation3 + $0x1b0] sm:$0xff]  ;;  %v112_v33 = vld [vmem:[#allocation3 + $0x1e8] sm:$0xff]  ;;  %v1576_v37 = vpack.c.bf16 %v103_v24, %v99_v20  ;;  %v166_v7 = vsub.s32 2, %v157_v57  ;;  %v170_v24 = vsub.s32 3, %v157_v57 }
  0x29   :  { %152 = vperm.xlu0 %1249, %v1569_v26   ;;  %v110_v34 = vld [vmem:[#allocation3 + $0x1d8] sm:$0xff]  ;;  %v1580_v38 = vpack.c.bf16 %v105_v30, %v101_v25  ;;  %v1582_v39 = vpack.c.bf16 %v112_v33, %v108_v31  ;;  %v107_v42 = vld [vmem:[#allocation3 + $0x1c0] sm:$0xff]  ;;  %v109_v46 = vld [vmem:[#allocation3 + $0x1d0] sm:$0xff] }
  0x2a   :  { %215 = vmatpush1.bf16.msra.mxu0 %v1546_v0  ;;  %v114_v35 = vld [vmem:[#allocation3 + $0x1f8] sm:$0xff]  ;;  %v111_v43 = vld [vmem:[#allocation3 + $0x1e0] sm:$0xff]  ;;  %v113_v47 = vld [vmem:[#allocation3 + $0x1f0] sm:$0xff] }
  0x2b   :  { %256 = vmatpush1.bf16.msra.mxu1 %v1550_v2  ;;  %216 = vmatprep.subr.bf16.mxu0 %v1552_v3  ;;  %v1585_v44 = vpack.c.bf16 %v114_v35, %v110_v34  ;;  %v1588_v48 = vpack.c.bf16 %v111_v43, %v107_v42  ;;  %v147_v49 = vld [vmem:[%s1976_s1] sm:$0xff]  ;;  %v1595_v50 = vpack.c.bf16 %v113_v47, %v109_v46 }
  0x2c   :  { %257 = vmatprep.subr.bf16.mxu1 %v1555_v8  ;;  %v205_v51 = vpack.c.bf16 %v147_v49, %v147_v49  ;;  %v49_v60 = vld [vmem:[%s1978_s3] sm:$0xf] }
  0x2d   :  { %1250 = vset.pattern.permute.xlu0 %v1415_v55  ;;  %v1640_v62 = vrot.slane %v49_v60, %v158_v59  ;;  %v50_v4 = vld [vmem:[%s1980_s5] sm:$0xf]  ;;  %v1645_v6 = vrot.slane %v49_v60, %v162_v61  ;;  %v1653_v16 = vrot.slane %v49_v60, %v166_v7  ;;  %v1660_v43 = vrot.slane %v49_v60, %v170_v24 }
  0x2e   :  { %217 = vmatpush1.bf16.msra.mxu0 %v1558_v17  ;;  %317 = vperm.xlu0 %1250, %v1569_v26   ;;  %v1648_v12 = vrot.slane %v50_v4, %v158_v59  ;;  %v1651_v15 = vrot.slane %v50_v4, %v162_v61  ;;  %v1658_v33 = vrot.slane %v50_v4, %v166_v7 }
  0x2f   :  { %258 = vmatpush1.bf16.msra.mxu1 %v1562_v21  ;;  %218 = vmatprep.subr.bf16.mxu0 %v1564_v22  ;;  %1990 = vst [vmem:[#allocation6_spill] sm:$0xff] %v1653_v16  ;;  %v1664_v7 = vrot.slane %v50_v4, %v170_v24 }
  0x30   :  { %259 = vmatprep.subr.bf16.mxu1 %v1572_v29 }
  0x32   :  { %219 = vmatpush1.bf16.msra.mxu0 %v1576_v37 }
  0x33   :  { %260 = vmatpush1.bf16.msra.mxu1 %v1580_v38  ;;  %220 = vmatprep.subr.bf16.mxu0 %v1582_v39 }
  0x34   :  { %261 = vmatprep.subr.bf16.mxu1 %v1585_v44 }
  0x36   :  { %221 = vmatpush1.bf16.msra.mxu0 %v1588_v48 }
  0x37   :  { %262 = vmatpush1.bf16.msra.mxu1 %v1595_v50  ;;  %329 = vmatprep.subr.bf16.mxu0 %v1495_v5 }
  0x38   :  { %370 = vmatprep.subr.bf16.mxu1 %v1497_v9 }
  0x39   :  { %239 = vmatmul.mubr.bf16.vlgmr.msra.gmra.mrb[0].mxu0 %v205_v51 }
  0x3a   :  { %280 = vmatmul.mubr.bf16.vlgmr.msra.gmra.mrb[0].mxu1 %v205_v51  ;;  %330 = vmatpush1.bf16.msra.mxu0 %v1499_v10 }
  0x3b   :  { %371 = vmatpush1.bf16.msra.mxu1 %v1502_v14  ;;  %331 = vmatprep.subr.bf16.mxu0 %v1506_v18 }
  0x3c   :  { %372 = vmatprep.subr.bf16.mxu1 %v1508_v19  ;;  %361 = vmatprep.mubr.bf16.mxu0 %v1986_v1 }
  0x3d   :  { %402 = vmatprep.mubr.bf16.mxu1 %v1986_v1 }
  0x3e   :  { %332 = vmatpush1.bf16.msra.mxu0 %v1511_v23 }
  0x3f   :  { %373 = vmatpush1.bf16.msra.mxu1 %v1515_v27  ;;  %333 = vmatprep.subr.bf16.mxu0 %v1517_v28 }
  0x40   :  { %374 = vmatprep.subr.bf16.mxu1 %v1519_v32 }
  0x42   :  { %334 = vmatpush1.bf16.msra.mxu0 %v1522_v36 }
  0x43   :  { %375 = vmatpush1.bf16.msra.mxu1 %v1526_v40  ;;  %335 = vmatprep.subr.bf16.mxu0 %v1528_v41 }
  0x44   :  { %376 = vmatprep.subr.bf16.mxu1 %v1531_v45 }
  0x46   :  { %336 = vmatpush1.bf16.msra.mxu0 %v1534_v52 }
  0x47   :  { %377 = vmatpush1.bf16.msra.mxu1 %v1538_v53  ;;  %337 = vmatprep.subr.bf16.mxu0 %v1540_v54 }
  0x48   :  { %378 = vmatprep.subr.bf16.mxu1 %v1543_v58 }
  0x4a   :  { %338 = vmatpush1.bf16.msra.mxu0 %v1546_v0 }
  0x4b   :  { %379 = vmatpush1.bf16.msra.mxu1 %v1550_v2  ;;  %339 = vmatprep.subr.bf16.mxu0 %v1552_v3 }
  0x4c   :  { %380 = vmatprep.subr.bf16.mxu1 %v1555_v8 }
  0x4e   :  { %340 = vmatpush1.bf16.msra.mxu0 %v1558_v17 }
  0x4f   :  { %381 = vmatpush1.bf16.msra.mxu1 %v1562_v21  ;;  %341 = vmatprep.subr.bf16.mxu0 %v1564_v22 }
  0x50   :  { %382 = vmatprep.subr.bf16.mxu1 %v1572_v29 }
  0x52   :  { %342 = vmatpush1.bf16.msra.mxu0 %v1576_v37 }
  0x53   :  { %383 = vmatpush1.bf16.msra.mxu1 %v1580_v38  ;;  %343 = vmatprep.subr.bf16.mxu0 %v1582_v39 }
  0x54   :  { %384 = vmatprep.subr.bf16.mxu1 %v1585_v44 }
  0x56   :  { %344 = vmatpush1.bf16.msra.mxu0 %v1588_v48 }
  0x57   :  { %385 = vmatpush1.bf16.msra.mxu1 %v1595_v50  ;;  %452 = vmatprep.subr.bf16.mxu0 %v1495_v5 }
  0x58   :  { %493 = vmatprep.subr.bf16.mxu1 %v1497_v9 }
  0xa8   :  { %v153_v63 = vpop.permute.xlu0 %152 }
  0xa9   :  { %v176_v11 = vmul.f32 %v1640_v62, %v153_v63  ;;  %v177_v13 = vmul.f32 %v1645_v6, %v153_v63  ;;  %v178_v31 = vmul.f32 %v1653_v16, %v153_v63 }
  0xab   :  { %v201_v20 = vadd.f32 %v1648_v12, %v176_v11  ;;  %v202_v25 = vadd.f32 %v1651_v15, %v177_v13  ;;  %v203_v57 = vadd.f32 %v1658_v33, %v178_v31  ;;  %v179_v11 = vmul.f32 %v1660_v43, %v153_v63  ;;  %v148_v63 = vld [vmem:[%s1977_s2] sm:$0xff] }
  0xad   :  { %v204_v60 = vadd.f32 %v1664_v7, %v179_v11  ;;  %v1416_v11 = vmov 2  }
  0xae   :  { %1251 = vset.pattern.permute.xlu1 %v1416_v11 }
  0xaf   :  { %440 = vperm.xlu1 %1251, %v1569_v26  }
 0x10c   :  { %v240_v30 = vpop.f32.mrb[0].mxu0 }
 0x10d   :  { %v288_v34 = vadd.f32 %v240_v30, %v201_v20  ;;  %v281_v35 = vpop.f32.mrb[0].mxu1  ;;  %v242_v42 = vpop.f32.mrb[1].mxu0 }
 0x10e   :  { %v289_v46 = vadd.f32 %v242_v42, %v202_v25  ;;  %v283_v47 = vpop.f32.mrb[1].mxu1  ;;  %v244_v49 = vpop.f32.mrb[2].mxu0  ;;  %v290_v13 = vadd.f32 %v281_v35, %v203_v57 }
 0x10f   :  { %v1212_v51 = vmul.f32 -1.442695, %v288_v34  ;;  %v245_v55 = vpop.f32.mrb[3].mxu0  ;;  %v285_v56 = vpop.f32.mrb[2].mxu1  ;;  %v291_v25 = vadd.f32 %v283_v47, %v204_v60 }
 0x110   :  { %v1213_v59 = vmul.f32 -1.442695, %v289_v46  ;;  %v286_v61 = vpop.f32.mrb[3].mxu1  ;;  %v1214_v20 = vmul.f32 -1.442695, %v290_v13  ;;  %v318_v13 = vpop.permute.xlu0 %317 }
 0x111   :  { %1258 = vpow2.f32 %v1212_v51  ;;  %v320_v60 = vmul.f32 %v318_v13, %v1640_v62 }
 0x112   :  { %1260 = vpow2.f32 %v1213_v59 }
 0x113   :  { %1262 = vpow2.f32 %v1214_v20  ;;  %v321_v20 = vmul.f32 %v318_v13, %v1645_v6 }
 0x114   :  { %1264 = vtanh.f32 %v291_v25  ;;  %v324_v25 = vadd.f32 %v320_v60, %v1648_v12 }
 0x11b   :  { %v1259_v30 = vpop.eup %1258 }
 0x11c   :  { %v301_v42 = vadd.f32 1.0, %v1259_v30  ;;  %v1261_v34 = vpop.eup %1260  ;;  %v325_v30 = vadd.f32 %v321_v20, %v1651_v15 }
 0x11d   :  { %v302_v31 = vadd.f32 1.0, %v1261_v34  ;;  %v1263_v46 = vpop.eup %1262 }
 0x11e   :  { %1266 = vrcp.f32 %v301_v42  ;;  %v1265_v49 = vpop.eup %1264  ;;  %v303_v35 = vadd.f32 1.0, %v1263_v46  ;;  %v322_v46 = vmul.f32 %v318_v13, %v1653_v16 }
 0x11f   :  { %1268 = vrcp.f32 %v302_v31 }
 0x120   :  { %1270 = vrcp.f32 %v303_v35 }
 0x128   :  { %v1267_v51 = vpop.eup %1266 }
 0x129   :  { %v312_v4 = vmul.f32 %v1267_v51, %v1265_v49  ;;  %v1269_v24 = vpop.eup %1268 }
 0x12a   :  { %v311_v55 = vmul.f32 %v1269_v24, %v148_v63  ;;  %v1271_v56 = vpop.eup %1270 }
 0x12c   :  { %v1670_v47 = vadd.f32 %v312_v4, %v311_v55 }
 0x12e   :  { %1272 = vtanh.f32 %v1670_v47 }
 0x138   :  { %v1273_v57 = vpop.eup %1272 }
 0x139   :  { %v315_v59 = vmul.f32 %v1273_v57, %v1271_v56 }
 0x13b   :  { %v328_v61 = vpack.c.bf16 %v315_v59, %v315_v59  ;;  %v323_v59 = vmul.f32 %v318_v13, %v1660_v43 }
 0x13d   :  { %362 = vmatmul.mubr.bf16.vlgmr.msra.gmra.mrb[4].mxu0 %v328_v61  ;;  %403 = vmatmul.mubr.bf16.vlgmr.msra.gmra.mrb[4].mxu1 %v328_v61  ;;  %v326_v61 = vadd.f32 %v322_v46, %v1658_v33  ;;  %v327_v11 = vadd.f32 %v323_v59, %v1664_v7  ;;  %v441_v59 = vpop.permute.xlu1 %440 }
 0x13e   :  { %453 = vmatpush1.bf16.msra.mxu0 %v1499_v10  ;;  %494 = vmatpush1.bf16.msra.mxu1 %v1502_v14 }
 0x13f   :  { %454 = vmatprep.subr.bf16.mxu0 %v1506_v18  ;;  %495 = vmatprep.subr.bf16.mxu1 %v1508_v19 }
 0x140   :  { %484 = vmatprep.mubr.bf16.mxu0 %v1986_v1  ;;  %525 = vmatprep.mubr.bf16.mxu1 %v1986_v1 }
 0x142   :  { %455 = vmatpush1.bf16.msra.mxu0 %v1511_v23  ;;  %496 = vmatpush1.bf16.msra.mxu1 %v1515_v27 }
 0x143   :  { %456 = vmatprep.subr.bf16.mxu0 %v1517_v28  ;;  %497 = vmatprep.subr.bf16.mxu1 %v1519_v32 }
 0x146   :  { %457 = vmatpush1.bf16.msra.mxu0 %v1522_v36  ;;  %498 = vmatpush1.bf16.msra.mxu1 %v1526_v40 }
 0x147   :  { %458 = vmatprep.subr.bf16.mxu0 %v1528_v41  ;;  %499 = vmatprep.subr.bf16.mxu1 %v1531_v45 }
 0x14a   :  { %459 = vmatpush1.bf16.msra.mxu0 %v1534_v52  ;;  %500 = vmatpush1.bf16.msra.mxu1 %v1538_v53 }
 0x14b   :  { %460 = vmatprep.subr.bf16.mxu0 %v1540_v54  ;;  %501 = vmatprep.subr.bf16.mxu1 %v1543_v58 }
 0x14e   :  { %461 = vmatpush1.bf16.msra.mxu0 %v1546_v0  ;;  %502 = vmatpush1.bf16.msra.mxu1 %v1550_v2 }
 0x14f   :  { %462 = vmatprep.subr.bf16.mxu0 %v1552_v3  ;;  %503 = vmatprep.subr.bf16.mxu1 %v1555_v8 }
 0x152   :  { %463 = vmatpush1.bf16.msra.mxu0 %v1558_v17  ;;  %504 = vmatpush1.bf16.msra.mxu1 %v1562_v21 }
 0x153   :  { %464 = vmatprep.subr.bf16.mxu0 %v1564_v22  ;;  %505 = vmatprep.subr.bf16.mxu1 %v1572_v29 }
 0x156   :  { %465 = vmatpush1.bf16.msra.mxu0 %v1576_v37  ;;  %506 = vmatpush1.bf16.msra.mxu1 %v1580_v38 }
 0x157   :  { %466 = vmatprep.subr.bf16.mxu0 %v1582_v39  ;;  %507 = vmatprep.subr.bf16.mxu1 %v1585_v44 }
 0x15a   :  { %467 = vmatpush1.bf16.msra.mxu0 %v1588_v48  ;;  %508 = vmatpush1.bf16.msra.mxu1 %v1595_v50 }
 0x15b   :  { %575 = vmatprep.subr.bf16.mxu0 %v1495_v5  ;;  %616 = vmatprep.subr.bf16.mxu1 %v1497_v9 }
 0x210   :  { %v363_v42 = vpop.f32.mrb[4].mxu0  ;;  %v404_v34 = vpop.f32.mrb[4].mxu1 }
 0x211   :  { %v411_v31 = vadd.f32 %v363_v42, %v324_v25  ;;  %v365_v49 = vpop.f32.mrb[5].mxu0  ;;  %v406_v51 = vpop.f32.mrb[5].mxu1  ;;  %v413_v60 = vadd.f32 %v404_v34, %v326_v61  ;;  %v443_v61 = vmul.f32 %v441_v59, %v1640_v62 }
 0x212   :  { %v412_v63 = vadd.f32 %v365_v49, %v325_v30  ;;  %v367_v4 = vpop.f32.mrb[6].mxu0  ;;  %v408_v24 = vpop.f32.mrb[6].mxu1  ;;  %v414_v20 = vadd.f32 %v406_v51, %v327_v11  ;;  %v444_v11 = vmul.f32 %v441_v59, %v1645_v6 }
 0x213   :  { %v1215_v35 = vmul.f32 -1.442695, %v411_v31  ;;  %v368_v55 = vpop.f32.mrb[7].mxu0  ;;  %v409_v56 = vpop.f32.mrb[7].mxu1  ;;  %v1217_v25 = vmul.f32 -1.442695, %v413_v60  ;;  %v447_v60 = vadd.f32 %v443_v61, %v1648_v12 }
 0x214   :  { %v1216_v57 = vmul.f32 -1.442695, %v412_v63 }
 0x215   :  { %1274 = vpow2.f32 %v1215_v35 }
 0x216   :  { %1276 = vpow2.f32 %v1216_v57 }
 0x217   :  { %1278 = vtanh.f32 %v414_v20  ;;  %v448_v20 = vadd.f32 %v444_v11, %v1651_v15 }
 0x218   :  { %1280 = vpow2.f32 %v1217_v25 }
 0x21f   :  { %v1275_v42 = vpop.eup %1274 }
 0x220   :  { %v424_v1 = vadd.f32 1.0, %v1275_v42  ;;  %v1277_v30 = vpop.eup %1276 }
 0x221   :  { %v425_v31 = vadd.f32 1.0, %v1277_v30  ;;  %v1279_v49 = vpop.eup %1278 }
 0x222   :  { %1282 = vrcp.f32 %v424_v1  ;;  %v1281_v63 = vpop.eup %1280  ;;  %v1991_v1 = vmov 0  }
 0x223   :  { %1284 = vrcp.f32 %v425_v31  ;;  %v426_v46 = vadd.f32 1.0, %v1281_v63  ;;  %v445_v31 = vmul.f32 %v441_v59, %v1653_v16 }
 0x225   :  { %1286 = vrcp.f32 %v426_v46 }
 0x22c   :  { %v1283_v13 = vpop.eup %1282 }
 0x22d   :  { %v435_v4 = vmul.f32 %v1283_v13, %v1279_v49  ;;  %v1285_v24 = vpop.eup %1284 }
 0x22e   :  { %v434_v35 = vmul.f32 %v1285_v24, %v1670_v47  ;;  %v1417_v47 = vmov 3  }
 0x22f   :  { %v1287_v34 = vpop.eup %1286  ;;  %1252 = vset.pattern.permute.xlu1 %v1417_v47 }
 0x230   :  { %v1717_v55 = vadd.f32 %v435_v4, %v434_v35  ;;  %563 = vperm.xlu1 %1252, %v1569_v26  }
 0x232   :  { %1288 = vtanh.f32 %v1717_v55 }
 0x23c   :  { %v1289_v51 = vpop.eup %1288 }
 0x23d   :  { %v438_v56 = vmul.f32 %v1289_v51, %v1287_v34 }
 0x23f   :  { %v451_v57 = vpack.c.bf16 %v438_v56, %v438_v56  ;;  %v446_v56 = vmul.f32 %v441_v59, %v1660_v43 }
 0x241   :  { %485 = vmatmul.mubr.bf16.vlgmr.msra.gmra.mrb[8].mxu0 %v451_v57  ;;  %526 = vmatmul.mubr.bf16.vlgmr.msra.gmra.mrb[8].mxu1 %v451_v57  ;;  %v449_v57 = vadd.f32 %v445_v31, %v1658_v33  ;;  %v450_v47 = vadd.f32 %v446_v56, %v1664_v7 }
 0x242   :  { %576 = vmatpush1.bf16.msra.mxu0 %v1499_v10  ;;  %617 = vmatpush1.bf16.msra.mxu1 %v1502_v14 }
 0x243   :  { %577 = vmatprep.subr.bf16.mxu0 %v1506_v18  ;;  %618 = vmatprep.subr.bf16.mxu1 %v1508_v19 }
 0x244   :  { %607 = vmatprep.mubr.bf16.mxu0 %v1991_v1  ;;  %648 = vmatprep.mubr.bf16.mxu1 %v1991_v1 }
 0x246   :  { %578 = vmatpush1.bf16.msra.mxu0 %v1511_v23  ;;  %619 = vmatpush1.bf16.msra.mxu1 %v1515_v27 }
 0x247   :  { %579 = vmatprep.subr.bf16.mxu0 %v1517_v28  ;;  %620 = vmatprep.subr.bf16.mxu1 %v1519_v32 }
 0x24a   :  { %580 = vmatpush1.bf16.msra.mxu0 %v1522_v36  ;;  %621 = vmatpush1.bf16.msra.mxu1 %v1526_v40 }
 0x24b   :  { %581 = vmatprep.subr.bf16.mxu0 %v1528_v41  ;;  %622 = vmatprep.subr.bf16.mxu1 %v1531_v45 }
 0x24e   :  { %582 = vmatpush1.bf16.msra.mxu0 %v1534_v52  ;;  %623 = vmatpush1.bf16.msra.mxu1 %v1538_v53 }
 0x24f   :  { %583 = vmatprep.subr.bf16.mxu0 %v1540_v54  ;;  %624 = vmatprep.subr.bf16.mxu1 %v1543_v58 }
 0x252   :  { %584 = vmatpush1.bf16.msra.mxu0 %v1546_v0  ;;  %625 = vmatpush1.bf16.msra.mxu1 %v1550_v2 }
 0x253   :  { %585 = vmatprep.subr.bf16.mxu0 %v1552_v3  ;;  %626 = vmatprep.subr.bf16.mxu1 %v1555_v8 }
 0x256   :  { %586 = vmatpush1.bf16.msra.mxu0 %v1558_v17  ;;  %627 = vmatpush1.bf16.msra.mxu1 %v1562_v21 }
 0x257   :  { %587 = vmatprep.subr.bf16.mxu0 %v1564_v22  ;;  %628 = vmatprep.subr.bf16.mxu1 %v1572_v29 }
 0x25a   :  { %588 = vmatpush1.bf16.msra.mxu0 %v1576_v37  ;;  %629 = vmatpush1.bf16.msra.mxu1 %v1580_v38 }
 0x25b   :  { %589 = vmatprep.subr.bf16.mxu0 %v1582_v39  ;;  %630 = vmatprep.subr.bf16.mxu1 %v1585_v44 }
 0x25e   :  { %590 = vmatpush1.bf16.msra.mxu0 %v1588_v48  ;;  %631 = vmatpush1.bf16.msra.mxu1 %v1595_v50 }
 0x25f   :  { %698 = vmatprep.subr.bf16.mxu0 %v1495_v5  ;;  %739 = vmatprep.subr.bf16.mxu1 %v1497_v9 }
 0x314   :  { %v486_v25 = vpop.f32.mrb[8].mxu0  ;;  %v527_v42 = vpop.f32.mrb[8].mxu1 }
 0x315   :  { %v534_v30 = vadd.f32 %v486_v25, %v447_v60  ;;  %v488_v49 = vpop.f32.mrb[9].mxu0  ;;  %v529_v63 = vpop.f32.mrb[9].mxu1  ;;  %v536_v61 = vadd.f32 %v527_v42, %v449_v57 }
 0x316   :  { %v535_v13 = vadd.f32 %v488_v49, %v448_v20  ;;  %v490_v4 = vpop.f32.mrb[10].mxu0  ;;  %v531_v24 = vpop.f32.mrb[10].mxu1  ;;  %v537_v11 = vadd.f32 %v529_v63, %v450_v47 }
 0x317   :  { %v1218_v46 = vmul.f32 -1.442695, %v534_v30  ;;  %v491_v35 = vpop.f32.mrb[11].mxu0  ;;  %v532_v34 = vpop.f32.mrb[11].mxu1  ;;  %v1220_v60 = vmul.f32 -1.442695, %v536_v61 }
 0x318   :  { %v1219_v51 = vmul.f32 -1.442695, %v535_v13 }
 0x319   :  { %1290 = vpow2.f32 %v1218_v46 }
 0x31a   :  { %1292 = vpow2.f32 %v1219_v51 }
 0x31b   :  { %1294 = vtanh.f32 %v537_v11 }
 0x31c   :  { %1296 = vpow2.f32 %v1220_v60 }
 0x323   :  { %v1291_v25 = vpop.eup %1290 }
 0x324   :  { %v547_v16 = vadd.f32 1.0, %v1291_v25  ;;  %v1293_v20 = vpop.eup %1292 }
 0x325   :  { %v548_v30 = vadd.f32 1.0, %v1293_v20  ;;  %v1295_v49 = vpop.eup %1294  ;;  %v1992_v20 = vld [vmem:[#allocation6_spill] sm:$0xff] }
 0x326   :  { %1298 = vrcp.f32 %v547_v16  ;;  %v1297_v13 = vpop.eup %1296  ;;  %v1418_v16 = vmov 4  }
 0x327   :  { %1300 = vrcp.f32 %v548_v30  ;;  %v549_v31 = vadd.f32 1.0, %v1297_v13  ;;  %1253 = vset.pattern.permute.xlu1 %v1418_v16 }
 0x328   :  { %686 = vperm.xlu1 %1253, %v1569_v26  }
 0x329   :  { %1302 = vrcp.f32 %v549_v31 }
 0x330   :  { %v1299_v59 = vpop.eup %1298 }
 0x331   :  { %v558_v4 = vmul.f32 %v1299_v59, %v1295_v49  ;;  %v1301_v24 = vpop.eup %1300 }
 0x332   :  { %v557_v46 = vmul.f32 %v1301_v24, %v1717_v55  ;;  %v564_v55 = vpop.permute.xlu1 %563 }
 0x333   :  { %v1303_v42 = vpop.eup %1302  ;;  %v566_v56 = vmul.f32 %v564_v55, %v1640_v62  ;;  %v567_v57 = vmul.f32 %v564_v55, %v1645_v6  ;;  %v568_v30 = vmul.f32 %v564_v55, %v1992_v20 }
 0x334   :  { %v1764_v35 = vadd.f32 %v558_v4, %v557_v46 }
 0x335   :  { %v570_v47 = vadd.f32 %v566_v56, %v1648_v12  ;;  %v571_v61 = vadd.f32 %v567_v57, %v1651_v15 }
 0x336   :  { %1304 = vtanh.f32 %v1764_v35 }
 0x340   :  { %v1305_v63 = vpop.eup %1304 }
 0x341   :  { %v561_v34 = vmul.f32 %v1305_v63, %v1303_v42 }
 0x343   :  { %v574_v51 = vpack.c.bf16 %v561_v34, %v561_v34  ;;  %v569_v34 = vmul.f32 %v564_v55, %v1660_v43 }
 0x345   :  { %608 = vmatmul.mubr.bf16.vlgmr.msra.gmra.mrb[12].mxu0 %v574_v51  ;;  %649 = vmatmul.mubr.bf16.vlgmr.msra.gmra.mrb[12].mxu1 %v574_v51  ;;  %v572_v51 = vadd.f32 %v568_v30, %v1658_v33  ;;  %v573_v16 = vadd.f32 %v569_v34, %v1664_v7 }
 0x346   :  { %699 = vmatpush1.bf16.msra.mxu0 %v1499_v10  ;;  %740 = vmatpush1.bf16.msra.mxu1 %v1502_v14 }
 0x347   :  { %700 = vmatprep.subr.bf16.mxu0 %v1506_v18  ;;  %741 = vmatprep.subr.bf16.mxu1 %v1508_v19 }
 0x348   :  { %730 = vmatprep.mubr.bf16.mxu0 %v1991_v1  ;;  %771 = vmatprep.mubr.bf16.mxu1 %v1991_v1 }
 0x34a   :  { %701 = vmatpush1.bf16.msra.mxu0 %v1511_v23  ;;  %742 = vmatpush1.bf16.msra.mxu1 %v1515_v27 }
 0x34b   :  { %702 = vmatprep.subr.bf16.mxu0 %v1517_v28  ;;  %743 = vmatprep.subr.bf16.mxu1 %v1519_v32 }
 0x34e   :  { %703 = vmatpush1.bf16.msra.mxu0 %v1522_v36  ;;  %744 = vmatpush1.bf16.msra.mxu1 %v1526_v40 }
 0x34f   :  { %704 = vmatprep.subr.bf16.mxu0 %v1528_v41  ;;  %745 = vmatprep.subr.bf16.mxu1 %v1531_v45 }
 0x352   :  { %705 = vmatpush1.bf16.msra.mxu0 %v1534_v52  ;;  %746 = vmatpush1.bf16.msra.mxu1 %v1538_v53 }
 0x353   :  { %706 = vmatprep.subr.bf16.mxu0 %v1540_v54  ;;  %747 = vmatprep.subr.bf16.mxu1 %v1543_v58 }
 0x356   :  { %707 = vmatpush1.bf16.msra.mxu0 %v1546_v0  ;;  %748 = vmatpush1.bf16.msra.mxu1 %v1550_v2 }
 0x357   :  { %708 = vmatprep.subr.bf16.mxu0 %v1552_v3  ;;  %749 = vmatprep.subr.bf16.mxu1 %v1555_v8 }
 0x35a   :  { %709 = vmatpush1.bf16.msra.mxu0 %v1558_v17  ;;  %750 = vmatpush1.bf16.msra.mxu1 %v1562_v21 }
 0x35b   :  { %710 = vmatprep.subr.bf16.mxu0 %v1564_v22  ;;  %751 = vmatprep.subr.bf16.mxu1 %v1572_v29 }
 0x35e   :  { %711 = vmatpush1.bf16.msra.mxu0 %v1576_v37  ;;  %752 = vmatpush1.bf16.msra.mxu1 %v1580_v38 }
 0x35f   :  { %712 = vmatprep.subr.bf16.mxu0 %v1582_v39  ;;  %753 = vmatprep.subr.bf16.mxu1 %v1585_v44 }
 0x362   :  { %713 = vmatpush1.bf16.msra.mxu0 %v1588_v48  ;;  %754 = vmatpush1.bf16.msra.mxu1 %v1595_v50 }
 0x363   :  { %821 = vmatprep.subr.bf16.mxu0 %v1495_v5  ;;  %862 = vmatprep.subr.bf16.mxu1 %v1497_v9 }
 0x418   :  { %v609_v11 = vpop.f32.mrb[12].mxu0  ;;  %v650_v60 = vpop.f32.mrb[12].mxu1 }
 0x419   :  { %v657_v25 = vadd.f32 %v609_v11, %v570_v47  ;;  %v611_v49 = vpop.f32.mrb[13].mxu0  ;;  %v652_v13 = vpop.f32.mrb[13].mxu1  ;;  %v659_v56 = vadd.f32 %v650_v60, %v572_v51 }
 0x41a   :  { %v658_v59 = vadd.f32 %v611_v49, %v571_v61  ;;  %v613_v4 = vpop.f32.mrb[14].mxu0  ;;  %v654_v24 = vpop.f32.mrb[14].mxu1  ;;  %v660_v57 = vadd.f32 %v652_v13, %v573_v16 }
 0x41b   :  { %v1221_v31 = vmul.f32 -1.442695, %v657_v25  ;;  %v614_v46 = vpop.f32.mrb[15].mxu0  ;;  %v655_v42 = vpop.f32.mrb[15].mxu1  ;;  %v1223_v47 = vmul.f32 -1.442695, %v659_v56 }
 0x41c   :  { %v1222_v63 = vmul.f32 -1.442695, %v658_v59 }
 0x41d   :  { %1306 = vpow2.f32 %v1221_v31 }
 0x41e   :  { %1308 = vpow2.f32 %v1222_v63 }
 0x41f   :  { %1310 = vtanh.f32 %v660_v57 }
 0x420   :  { %1312 = vpow2.f32 %v1223_v47 }
 0x427   :  { %v1307_v11 = vpop.eup %1306 }
 0x428   :  { %v670_v20 = vadd.f32 1.0, %v1307_v11  ;;  %v1309_v61 = vpop.eup %1308 }
 0x429   :  { %v671_v25 = vadd.f32 1.0, %v1309_v61  ;;  %v1311_v49 = vpop.eup %1310  ;;  %v1993_v61 = vld [vmem:[#allocation6_spill] sm:$0xff] }
 0x42a   :  { %1314 = vrcp.f32 %v670_v20  ;;  %v1313_v59 = vpop.eup %1312  ;;  %v687_v20 = vpop.permute.xlu1 %686 }
 0x42b   :  { %1316 = vrcp.f32 %v671_v25  ;;  %v672_v30 = vadd.f32 1.0, %v1313_v59  ;;  %v689_v34 = vmul.f32 %v687_v20, %v1640_v62  ;;  %v690_v51 = vmul.f32 %v687_v20, %v1645_v6 }
 0x42c   :  { %v691_v25 = vmul.f32 %v687_v20, %v1993_v61 }
 0x42d   :  { %1318 = vrcp.f32 %v672_v30  ;;  %v693_v16 = vadd.f32 %v689_v34, %v1648_v12  ;;  %v694_v56 = vadd.f32 %v690_v51, %v1651_v15 }
 0x434   :  { %v1315_v55 = vpop.eup %1314 }
 0x435   :  { %v681_v4 = vmul.f32 %v1315_v55, %v1311_v49  ;;  %v1317_v24 = vpop.eup %1316 }
 0x436   :  { %v680_v31 = vmul.f32 %v1317_v24, %v1764_v35  ;;  %v1419_v35 = vmov 5  }
 0x437   :  { %v1319_v60 = vpop.eup %1318  ;;  %1254 = vset.pattern.permute.xlu0 %v1419_v35 }
 0x438   :  { %v1811_v46 = vadd.f32 %v681_v4, %v680_v31  ;;  %809 = vperm.xlu0 %1254, %v1569_v26  }
 0x43a   :  { %1320 = vtanh.f32 %v1811_v46 }
 0x444   :  { %v1321_v13 = vpop.eup %1320 }
 0x445   :  { %v684_v42 = vmul.f32 %v1321_v13, %v1319_v60  ;;  %v692_v13 = vmul.f32 %v687_v20, %v1660_v43 }
 0x447   :  { %v697_v63 = vpack.c.bf16 %v684_v42, %v684_v42  ;;  %v695_v42 = vadd.f32 %v691_v25, %v1658_v33 }
 0x449   :  { %731 = vmatmul.mubr.bf16.vlgmr.msra.gmra.mrb[16].mxu0 %v697_v63  ;;  %772 = vmatmul.mubr.bf16.vlgmr.msra.gmra.mrb[16].mxu1 %v697_v63  ;;  %v696_v63 = vadd.f32 %v692_v13, %v1664_v7  ;;  %v1898_v13 = vld [vmem:[%s1975_s0] sm:$0xff] }
 0x44a   :  { %822 = vmatpush1.bf16.msra.mxu0 %v1499_v10  ;;  %863 = vmatpush1.bf16.msra.mxu1 %v1502_v14 }
 0x44b   :  { %823 = vmatprep.subr.bf16.mxu0 %v1506_v18  ;;  %864 = vmatprep.subr.bf16.mxu1 %v1508_v19 }
 0x44c   :  { %853 = vmatprep.mubr.bf16.mxu0 %v1991_v1  ;;  %894 = vmatprep.mubr.bf16.mxu1 %v1991_v1 }
 0x44e   :  { %824 = vmatpush1.bf16.msra.mxu0 %v1511_v23  ;;  %865 = vmatpush1.bf16.msra.mxu1 %v1515_v27 }
 0x44f   :  { %825 = vmatprep.subr.bf16.mxu0 %v1517_v28  ;;  %866 = vmatprep.subr.bf16.mxu1 %v1519_v32 }
 0x452   :  { %826 = vmatpush1.bf16.msra.mxu0 %v1522_v36  ;;  %867 = vmatpush1.bf16.msra.mxu1 %v1526_v40 }
 0x453   :  { %827 = vmatprep.subr.bf16.mxu0 %v1528_v41  ;;  %868 = vmatprep.subr.bf16.mxu1 %v1531_v45 }
 0x456   :  { %828 = vmatpush1.bf16.msra.mxu0 %v1534_v52  ;;  %869 = vmatpush1.bf16.msra.mxu1 %v1538_v53 }
 0x457   :  { %829 = vmatprep.subr.bf16.mxu0 %v1540_v54  ;;  %870 = vmatprep.subr.bf16.mxu1 %v1543_v58 }
 0x45a   :  { %830 = vmatpush1.bf16.msra.mxu0 %v1546_v0  ;;  %871 = vmatpush1.bf16.msra.mxu1 %v1550_v2 }
 0x45b   :  { %831 = vmatprep.subr.bf16.mxu0 %v1552_v3  ;;  %872 = vmatprep.subr.bf16.mxu1 %v1555_v8 }
 0x45e   :  { %832 = vmatpush1.bf16.msra.mxu0 %v1558_v17  ;;  %873 = vmatpush1.bf16.msra.mxu1 %v1562_v21 }
 0x45f   :  { %833 = vmatprep.subr.bf16.mxu0 %v1564_v22  ;;  %874 = vmatprep.subr.bf16.mxu1 %v1572_v29 }
 0x462   :  { %834 = vmatpush1.bf16.msra.mxu0 %v1576_v37  ;;  %875 = vmatpush1.bf16.msra.mxu1 %v1580_v38 }
 0x463   :  { %835 = vmatprep.subr.bf16.mxu0 %v1582_v39  ;;  %876 = vmatprep.subr.bf16.mxu1 %v1585_v44 }
 0x466   :  { %836 = vmatpush1.bf16.msra.mxu0 %v1588_v48  ;;  %877 = vmatpush1.bf16.msra.mxu1 %v1595_v50 }
 0x467   :  { %944 = vmatprep.subr.bf16.mxu0 %v1495_v5  ;;  %985 = vmatprep.subr.bf16.mxu1 %v1497_v9 }
 0x51c   :  { %v732_v57 = vpop.f32.mrb[16].mxu0  ;;  %v773_v47 = vpop.f32.mrb[16].mxu1 }
 0x51d   :  { %v780_v11 = vadd.f32 %v732_v57, %v693_v16  ;;  %v734_v49 = vpop.f32.mrb[17].mxu0  ;;  %v775_v59 = vpop.f32.mrb[17].mxu1  ;;  %v782_v35 = vadd.f32 %v773_v47, %v695_v42 }
 0x51e   :  { %v781_v55 = vadd.f32 %v734_v49, %v694_v56  ;;  %v736_v4 = vpop.f32.mrb[18].mxu0  ;;  %v777_v24 = vpop.f32.mrb[18].mxu1  ;;  %v783_v34 = vadd.f32 %v775_v59, %v696_v63 }
 0x51f   :  { %v1224_v26 = vmul.f32 -1.442695, %v780_v11  ;;  %v737_v30 = vpop.f32.mrb[19].mxu0  ;;  %v778_v31 = vpop.f32.mrb[19].mxu1  ;;  %v1226_v51 = vmul.f32 -1.442695, %v782_v35 }
 0x520   :  { %v1225_v60 = vmul.f32 -1.442695, %v781_v55  ;;  %v810_v42 = vpop.permute.xlu0 %809 }
 0x521   :  { %1322 = vpow2.f32 %v1224_v26  ;;  %v812_v63 = vmul.f32 %v810_v42, %v1640_v62  ;;  %v813_v35 = vmul.f32 %v810_v42, %v1645_v6 }
 0x522   :  { %1324 = vpow2.f32 %v1225_v60 }
 0x523   :  { %1326 = vtanh.f32 %v783_v34  ;;  %v816_v34 = vadd.f32 %v812_v63, %v1648_v12 }
 0x524   :  { %1328 = vpow2.f32 %v1226_v51 }
 0x52b   :  { %v1323_v16 = vpop.eup %1322 }
 0x52c   :  { %v793_v57 = vadd.f32 1.0, %v1323_v16  ;;  %v1325_v56 = vpop.eup %1324 }
 0x52d   :  { %v794_v11 = vadd.f32 1.0, %v1325_v56  ;;  %v1327_v49 = vpop.eup %1326 }
 0x52e   :  { %1330 = vrcp.f32 %v793_v57  ;;  %v1329_v55 = vpop.eup %1328  ;;  %v814_v57 = vmul.f32 %v810_v42, %v1993_v61 }
 0x52f   :  { %1332 = vrcp.f32 %v794_v11  ;;  %v795_v25 = vadd.f32 1.0, %v1329_v55 }
 0x531   :  { %1334 = vrcp.f32 %v795_v25 }
 0x538   :  { %v1331_v20 = vpop.eup %1330 }
 0x539   :  { %v804_v4 = vmul.f32 %v1331_v20, %v1327_v49  ;;  %v1333_v24 = vpop.eup %1332 }
 0x53a   :  { %v803_v26 = vmul.f32 %v1333_v24, %v1811_v46  ;;  %v1420_v46 = vmov 6  }
 0x53b   :  { %v1335_v47 = vpop.eup %1334  ;;  %1255 = vset.pattern.permute.xlu1 %v1420_v46 }
 0x53c   :  { %v1858_v30 = vadd.f32 %v804_v4, %v803_v26  ;;  %932 = vperm.xlu1 %1255, %v1898_v13  }
 0x53e   :  { %1336 = vtanh.f32 %v1858_v30 }
 0x548   :  { %v1337_v59 = vpop.eup %1336 }
 0x549   :  { %v807_v31 = vmul.f32 %v1337_v59, %v1335_v47  ;;  %v815_v47 = vmul.f32 %v810_v42, %v1660_v43  ;;  %v818_v59 = vadd.f32 %v814_v57, %v1658_v33 }
 0x54b   :  { %v820_v60 = vpack.c.bf16 %v807_v31, %v807_v31  ;;  %v819_v31 = vadd.f32 %v815_v47, %v1664_v7 }
 0x54d   :  { %854 = vmatmul.mubr.bf16.vlgmr.msra.gmra.mrb[20].mxu0 %v820_v60  ;;  %895 = vmatmul.mubr.bf16.vlgmr.msra.gmra.mrb[20].mxu1 %v820_v60 }
 0x54e   :  { %945 = vmatpush1.bf16.msra.mxu0 %v1499_v10  ;;  %986 = vmatpush1.bf16.msra.mxu1 %v1502_v14 }
 0x54f   :  { %946 = vmatprep.subr.bf16.mxu0 %v1506_v18  ;;  %987 = vmatprep.subr.bf16.mxu1 %v1508_v19 }
 0x550   :  { %976 = vmatprep.mubr.bf16.mxu0 %v1991_v1  ;;  %1017 = vmatprep.mubr.bf16.mxu1 %v1991_v1 }
 0x552   :  { %947 = vmatpush1.bf16.msra.mxu0 %v1511_v23  ;;  %988 = vmatpush1.bf16.msra.mxu1 %v1515_v27 }
 0x553   :  { %948 = vmatprep.subr.bf16.mxu0 %v1517_v28  ;;  %989 = vmatprep.subr.bf16.mxu1 %v1519_v32 }
 0x556   :  { %949 = vmatpush1.bf16.msra.mxu0 %v1522_v36  ;;  %990 = vmatpush1.bf16.msra.mxu1 %v1526_v40 }
 0x557   :  { %950 = vmatprep.subr.bf16.mxu0 %v1528_v41  ;;  %991 = vmatprep.subr.bf16.mxu1 %v1531_v45 }
 0x55a   :  { %951 = vmatpush1.bf16.msra.mxu0 %v1534_v52  ;;  %992 = vmatpush1.bf16.msra.mxu1 %v1538_v53 }
 0x55b   :  { %952 = vmatprep.subr.bf16.mxu0 %v1540_v54  ;;  %993 = vmatprep.subr.bf16.mxu1 %v1543_v58 }
 0x55e   :  { %953 = vmatpush1.bf16.msra.mxu0 %v1546_v0  ;;  %994 = vmatpush1.bf16.msra.mxu1 %v1550_v2 }
 0x55f   :  { %954 = vmatprep.subr.bf16.mxu0 %v1552_v3  ;;  %995 = vmatprep.subr.bf16.mxu1 %v1555_v8 }
 0x562   :  { %955 = vmatpush1.bf16.msra.mxu0 %v1558_v17  ;;  %996 = vmatpush1.bf16.msra.mxu1 %v1562_v21 }
 0x563   :  { %956 = vmatprep.subr.bf16.mxu0 %v1564_v22  ;;  %997 = vmatprep.subr.bf16.mxu1 %v1572_v29 }
 0x566   :  { %957 = vmatpush1.bf16.msra.mxu0 %v1576_v37  ;;  %998 = vmatpush1.bf16.msra.mxu1 %v1580_v38 }
 0x567   :  { %958 = vmatprep.subr.bf16.mxu0 %v1582_v39  ;;  %999 = vmatprep.subr.bf16.mxu1 %v1585_v44 }
 0x56a   :  { %959 = vmatpush1.bf16.msra.mxu0 %v1588_v48  ;;  %1000 = vmatpush1.bf16.msra.mxu1 %v1595_v50 }
 0x56b   :  { %1067 = vmatprep.subr.bf16.mxu0 %v1495_v5  ;;  %1108 = vmatprep.subr.bf16.mxu1 %v1497_v9  ;;  %v817_v5 = vadd.f32 %v813_v35, %v1651_v15 }
 0x620   :  { %v855_v51 = vpop.f32.mrb[20].mxu0  ;;  %v896_v9 = vpop.f32.mrb[20].mxu1 }
 0x621   :  { %v903_v16 = vadd.f32 %v855_v51, %v816_v34  ;;  %v857_v56 = vpop.f32.mrb[21].mxu0  ;;  %v898_v11 = vpop.f32.mrb[21].mxu1  ;;  %v905_v60 = vadd.f32 %v896_v9, %v818_v59 }
 0x622   :  { %v904_v49 = vadd.f32 %v857_v56, %v817_v5  ;;  %v859_v55 = vpop.f32.mrb[22].mxu0  ;;  %v900_v20 = vpop.f32.mrb[22].mxu1  ;;  %v906_v46 = vadd.f32 %v898_v11, %v819_v31 }
 0x623   :  { %v1227_v4 = vmul.f32 -1.442695, %v903_v16  ;;  %v860_v24 = vpop.f32.mrb[23].mxu0  ;;  %v901_v25 = vpop.f32.mrb[23].mxu1  ;;  %v1229_v63 = vmul.f32 -1.442695, %v905_v60 }
 0x624   :  { %v1228_v26 = vmul.f32 -1.442695, %v904_v49 }
 0x625   :  { %1338 = vpow2.f32 %v1227_v4 }
 0x626   :  { %1340 = vpow2.f32 %v1228_v26 }
 0x627   :  { %1342 = vtanh.f32 %v906_v46 }
 0x628   :  { %1344 = vpow2.f32 %v1229_v63 }
 0x62f   :  { %v1339_v35 = vpop.eup %1338 }
 0x630   :  { %v916_v34 = vadd.f32 1.0, %v1339_v35  ;;  %v1341_v5 = vpop.eup %1340 }
 0x631   :  { %v917_v51 = vadd.f32 1.0, %v1341_v5  ;;  %v1343_v16 = vpop.eup %1342 }
 0x632   :  { %1346 = vrcp.f32 %v916_v34  ;;  %v1345_v56 = vpop.eup %1344 }
 0x633   :  { %1348 = vrcp.f32 %v917_v51  ;;  %v918_v57 = vadd.f32 1.0, %v1345_v56 }
 0x635   :  { %1350 = vrcp.f32 %v918_v57 }
 0x63c   :  { %v1347_v42 = vpop.eup %1346 }
 0x63d   :  { %v927_v49 = vmul.f32 %v1347_v42, %v1343_v16  ;;  %v1349_v55 = vpop.eup %1348 }
 0x63e   :  { %v926_v20 = vmul.f32 %v1349_v55, %v1858_v30 }
 0x63f   :  { %v1351_v9 = vpop.eup %1350 }
 0x640   :  { %v1910_v4 = vadd.f32 %v927_v49, %v926_v20 }
 0x642   :  { %1352 = vtanh.f32 %v1910_v4 }
 0x64c   :  { %v1353_v11 = vpop.eup %1352 }
 0x64d   :  { %v930_v24 = vmul.f32 %v1353_v11, %v1351_v9 }
 0x64f   :  { %v943_v25 = vpack.c.bf16 %v930_v24, %v930_v24 }
 0x651   :  { %977 = vmatmul.mubr.bf16.vlgmr.msra.gmra.mrb[24].mxu0 %v943_v25  ;;  %1018 = vmatmul.mubr.bf16.vlgmr.msra.gmra.mrb[24].mxu1 %v943_v25 }
 0x652   :  { %1068 = vmatpush1.bf16.msra.mxu0 %v1499_v10  ;;  %1109 = vmatpush1.bf16.msra.mxu1 %v1502_v14  ;;  %v1421_v10 = vmov 7   ;;  %v933_v14 = vpop.permute.xlu1 %932 }
 0x653   :  { %1069 = vmatprep.subr.bf16.mxu0 %v1506_v18  ;;  %1110 = vmatprep.subr.bf16.mxu1 %v1508_v19  ;;  %v935_v18 = vmul.f32 %v933_v14, %v1640_v62  ;;  %v936_v19 = vmul.f32 %v933_v14, %v1645_v6 }
 0x654   :  { %1099 = vmatprep.mubr.bf16.mxu0 %v1991_v1  ;;  %1140 = vmatprep.mubr.bf16.mxu1 %v1991_v1 }
 0x655   :  { %1256 = vset.pattern.permute.xlu1 %v1421_v10  ;;  %1257 = vset.pattern.permute.xlu0 %v1421_v10 }
 0x656   :  { %1070 = vmatpush1.bf16.msra.mxu0 %v1511_v23  ;;  %1111 = vmatpush1.bf16.msra.mxu1 %v1515_v27  ;;  %v939_v23 = vadd.f32 %v935_v18, %v1648_v12  ;;  %v940_v27 = vadd.f32 %v936_v19, %v1651_v15 }
 0x657   :  { %1071 = vmatprep.subr.bf16.mxu0 %v1517_v28  ;;  %1112 = vmatprep.subr.bf16.mxu1 %v1519_v32 }
 0x658   :  { %1055 = vperm.xlu1 %1256, %v1898_v13  }
 0x65a   :  { %1072 = vmatpush1.bf16.msra.mxu0 %v1522_v36  ;;  %1113 = vmatpush1.bf16.msra.mxu1 %v1526_v40  ;;  %v937_v40 = vmul.f32 %v933_v14, %v1993_v61 }
 0x65b   :  { %1073 = vmatprep.subr.bf16.mxu0 %v1528_v41  ;;  %1114 = vmatprep.subr.bf16.mxu1 %v1531_v45 }
 0x65e   :  { %1074 = vmatpush1.bf16.msra.mxu0 %v1534_v52  ;;  %1115 = vmatpush1.bf16.msra.mxu1 %v1538_v53 }
 0x65f   :  { %1075 = vmatprep.subr.bf16.mxu0 %v1540_v54  ;;  %1116 = vmatprep.subr.bf16.mxu1 %v1543_v58 }
 0x662   :  { %1076 = vmatpush1.bf16.msra.mxu0 %v1546_v0  ;;  %1117 = vmatpush1.bf16.msra.mxu1 %v1550_v2 }
 0x663   :  { %1077 = vmatprep.subr.bf16.mxu0 %v1552_v3  ;;  %1118 = vmatprep.subr.bf16.mxu1 %v1555_v8  ;;  %v938_v8 = vmul.f32 %v933_v14, %v1660_v43 }
 0x666   :  { %1078 = vmatpush1.bf16.msra.mxu0 %v1558_v17  ;;  %1119 = vmatpush1.bf16.msra.mxu1 %v1562_v21  ;;  %v941_v17 = vadd.f32 %v937_v40, %v1658_v33  ;;  %v942_v21 = vadd.f32 %v938_v8, %v1664_v7 }
 0x667   :  { %1079 = vmatprep.subr.bf16.mxu0 %v1564_v22  ;;  %1120 = vmatprep.subr.bf16.mxu1 %v1572_v29 }
 0x66a   :  { %1080 = vmatpush1.bf16.msra.mxu0 %v1576_v37  ;;  %1121 = vmatpush1.bf16.msra.mxu1 %v1580_v38 }
 0x66b   :  { %1081 = vmatprep.subr.bf16.mxu0 %v1582_v39  ;;  %1122 = vmatprep.subr.bf16.mxu1 %v1585_v44 }
 0x66e   :  { %1082 = vmatpush1.bf16.msra.mxu0 %v1588_v48  ;;  %1123 = vmatpush1.bf16.msra.mxu1 %v1595_v50 }
 0x6d7   :  { %v1056_v34 = vpop.permute.xlu1 %1055 }
 0x6d8   :  { %v1058_v5 = vmul.f32 %v1056_v34, %v1640_v62  ;;  %v1059_v51 = vmul.f32 %v1056_v34, %v1645_v6  ;;  %v1060_v55 = vmul.f32 %v1056_v34, %v1993_v61  ;;  %v1061_v62 = vmul.f32 %v1056_v34, %v1660_v43 }
 0x6da   :  { %v1062_v16 = vadd.f32 %v1058_v5, %v1648_v12  ;;  %v1063_v56 = vadd.f32 %v1059_v51, %v1651_v15  ;;  %v1064_v12 = vadd.f32 %v1060_v55, %v1658_v33  ;;  %v1065_v15 = vadd.f32 %v1061_v62, %v1664_v7 }
 0x724   :  { %v978_v28 = vpop.f32.mrb[24].mxu0  ;;  %v1019_v32 = vpop.f32.mrb[24].mxu1 }
 0x725   :  { %v1026_v36 = vadd.f32 %v978_v28, %v939_v23  ;;  %v980_v41 = vpop.f32.mrb[25].mxu0  ;;  %v1021_v45 = vpop.f32.mrb[25].mxu1  ;;  %v1028_v22 = vadd.f32 %v1019_v32, %v941_v17 }
 0x726   :  { %v1027_v52 = vadd.f32 %v980_v41, %v940_v27  ;;  %v982_v53 = vpop.f32.mrb[26].mxu0  ;;  %v1023_v54 = vpop.f32.mrb[26].mxu1  ;;  %v1029_v29 = vadd.f32 %v1021_v45, %v942_v21 }
 0x727   :  { %v1230_v58 = vmul.f32 -1.442695, %v1026_v36  ;;  %v983_v0 = vpop.f32.mrb[27].mxu0  ;;  %v1024_v2 = vpop.f32.mrb[27].mxu1  ;;  %v1232_v37 = vmul.f32 -1.442695, %v1028_v22 }
 0x728   :  { %v1231_v3 = vmul.f32 -1.442695, %v1027_v52 }
 0x729   :  { %1354 = vpow2.f32 %v1230_v58  ;;  %v1236_v58 = vld [vmem:[%s1981_s6] ss:$0 sm:$0xff] }
 0x72a   :  { %1356 = vpow2.f32 %v1231_v3  ;;  %v1237_v3 = vld [vmem:[#allocation2] ss:$0 sm:$0xff] }
 0x72b   :  { %1358 = vtanh.f32 %v1029_v29 }
 0x72c   :  { %1360 = vpow2.f32 %v1232_v37 }
 0x733   :  { %v1355_v38 = vpop.eup %1354 }
 0x734   :  { %v1039_v39 = vadd.f32 1.0, %v1355_v38  ;;  %v1357_v44 = vpop.eup %1356 }
 0x735   :  { %v1040_v48 = vadd.f32 1.0, %v1357_v44  ;;  %v1359_v50 = vpop.eup %1358 }
 0x736   :  { %1362 = vrcp.f32 %v1039_v39  ;;  %v1361_v1 = vpop.eup %1360 }
 0x737   :  { %1364 = vrcp.f32 %v1040_v48  ;;  %v1041_v47 = vadd.f32 1.0, %v1361_v1 }
 0x739   :  { %1366 = vrcp.f32 %v1041_v47 }
 0x740   :  { %v1363_v30 = vpop.eup %1362 }
 0x741   :  { %v1050_v13 = vmul.f32 %v1363_v30, %v1359_v50  ;;  %v1365_v26 = vpop.eup %1364 }
 0x742   :  { %v1049_v59 = vmul.f32 %v1365_v26, %v1910_v4 }
 0x743   :  { %v1367_v60 = vpop.eup %1366 }
 0x744   :  { %v1051_v31 = vadd.f32 %v1050_v13, %v1049_v59 }
 0x746   :  { %1368 = vtanh.f32 %v1051_v31 }
 0x750   :  { %v1369_v46 = vpop.eup %1368 }
 0x751   :  { %v1053_v63 = vmul.f32 %v1369_v46, %v1367_v60 }
 0x753   :  { %v1066_v35 = vpack.c.bf16 %v1053_v63, %v1053_v63 }
 0x755   :  { %1100 = vmatmul.mubr.bf16.vlgmr.msra.gmra.mrb[28].mxu0 %v1066_v35  ;;  %1141 = vmatmul.mubr.bf16.vlgmr.msra.gmra.mrb[28].mxu1 %v1066_v35 }
 0x828   :  { %v1101_v42 = vpop.f32.mrb[28].mxu0  ;;  %v1142_v49 = vpop.f32.mrb[28].mxu1 }
 0x829   :  { %v1149_v57 = vadd.f32 %v1101_v42, %v1062_v16  ;;  %v1103_v20 = vpop.f32.mrb[29].mxu0  ;;  %v1144_v4 = vpop.f32.mrb[29].mxu1  ;;  %v1151_v18 = vadd.f32 %v1142_v49, %v1064_v12 }
 0x82a   :  { %v1150_v9 = vadd.f32 %v1103_v20, %v1063_v56  ;;  %v1105_v11 = vpop.f32.mrb[30].mxu0  ;;  %v1146_v24 = vpop.f32.mrb[30].mxu1  ;;  %v1152_v61 = vadd.f32 %v1144_v4, %v1065_v15 }
 0x82b   :  { %v1233_v25 = vmul.f32 -1.442695, %v1149_v57  ;;  %v1106_v10 = vpop.f32.mrb[31].mxu0  ;;  %v1147_v14 = vpop.f32.mrb[31].mxu1  ;;  %v1235_v19 = vmul.f32 -1.442695, %v1151_v18 }
 0x82c   :  { %v1234_v6 = vmul.f32 -1.442695, %v1150_v9 }
 0x82d   :  { %1370 = vpow2.f32 %v1233_v25 }
 0x82e   :  { %1372 = vpow2.f32 %v1234_v6 }
 0x82f   :  { %1374 = vtanh.f32 %v1152_v61 }
 0x830   :  { %1376 = vpow2.f32 %v1235_v19 }
 0x837   :  { %v1371_v23 = vpop.eup %1370 }
 0x838   :  { %v1162_v27 = vadd.f32 1.0, %v1371_v23  ;;  %v1373_v28 = vpop.eup %1372 }
 0x839   :  { %v1163_v32 = vadd.f32 1.0, %v1373_v28  ;;  %v1375_v36 = vpop.eup %1374 }
 0x83a   :  { %1378 = vrcp.f32 %v1162_v27  ;;  %v1377_v43 = vpop.eup %1376 }
 0x83b   :  { %1380 = vrcp.f32 %v1163_v32  ;;  %v1164_v33 = vadd.f32 1.0, %v1377_v43 }
 0x83d   :  { %1382 = vrcp.f32 %v1164_v33 }
 0x844   :  { %v1379_v40 = vpop.eup %1378 }
 0x845   :  { %v1173_v41 = vmul.f32 %v1379_v40, %v1375_v36  ;;  %v1381_v45 = vpop.eup %1380 }
 0x846   :  { %v1172_v52 = vmul.f32 %v1381_v45, %v1051_v31 }
 0x847   :  { %v1383_v7 = vpop.eup %1382 }
 0x848   :  { %v1174_v53 = vadd.f32 %v1173_v41, %v1172_v52 }
 0x84a   :  { %1198 = vst [vmem:[%s1985_s10] sm:$0xff] %v1174_v53  ;;  %1384 = vtanh.f32 %v1174_v53 }
 0x854   :  { %v1385_v54 = vpop.eup %1384 }
 0x855   :  { %v1176_v0 = vmul.f32 %v1385_v54, %v1383_v7 }
 0x857   :  { %v1184_v2 = vmul.f32 %v1236_v58, %v1176_v0  ;;  %1197 = vst [vmem:[%s1984_s9] sm:$0xff] %v1176_v0 }
 0x859   :  { %1185 = vadd.xlane.f32.xlu0 %v1184_v2 }
 0x8e6   :  { %v1186_v8 = vpop.xlane.xlu0 %1185 }
 0x8e7   :  { %v1194_v17 = vadd.f32 %v1237_v3, %v1186_v8 }
 0x8e9   :  { %1196 = vst.msk [vmem:[%s1983_s8] sm:$0xff] %vm1195_vm0, %v1194_v17 }
 0x8ea   :  { %1211 = vsyncpa [#allocation4], 1 }

</bundles_post_ra>
